<compile_context>
chip_gen: v6e
topology: v6e:2x2x1
jax: 0.10.0
libtpu: 0.0.40
codegen_flags: <defaults>
</compile_context>

<pallas_src>
import jax
import jax.numpy as jnp
from jax.experimental import pallas as pl
from jax.experimental.pallas import tpu as pltpu

HIDDEN = 128               # nn.LSTMCell(hidden_size=128)
N_HEADS = 11 + 2 + 1 + 1   # step(11) + experience(2) + rsd(1) + s(1)
HEAD_PAD = 128             # pad head output to 128 lanes -> unmasked, lane-dense store


# ----------------------------------------------------------------------------
# Fused kernel: whole LSTM recurrence + MtFc heads in one invocation.
# Inputs (all VMEM resident, raw / unfolded):
#   x_ref     : (T, D)     input sequence (time-major, batch=1 squeezed)
#   mx_ref    : (1, D)     variational dropout mask on x
#   mh_ref    : (H, 1)     variational dropout mask on h (as a column)
#   wih_ref   : (D, 4H)    W_ih^T
#   whh_ref   : (H, 4H)    W_hh^T
#   b_ref     : (1, 4H)    b_ih + b_hh
#   wh_ref    : (H, 15)    fused MtFc weights (fc1|fc2|fc3|fc4)
#   bh_ref    : (1, 15)    fused MtFc bias
# Outputs:
#   out_ref   : (T, 128)   heads output (first 15 lanes valid)
#   hT_ref    : (1, H)     final hidden state (for a stateful caller)
#   cT_ref    : (1, H)     final cell state
# Scratch:
#   xw_ref    : (T, 4H) f32   precomputed, gate-scaled input projections
#   hh_ref    : (T, H)  f32   hidden-state history
#   whhb_ref  : (H, 4H) bf16  masked + gate-scaled + bf16-cast W_hh^T
#   whp_ref   : (H, 128) f32  head weights padded 15 -> 128 lanes
#   bhp_ref   : (1, 128) f32  head bias padded 15 -> 128 lanes
# ----------------------------------------------------------------------------
def fused_rnn_kernel(x_ref, mx_ref, mh_ref, wih_ref, whh_ref, b_ref,
                     wh_ref, bh_ref,
                     out_ref, hT_ref, cT_ref,
                     xw_ref, hh_ref, whhb_ref, whp_ref, bhp_ref):
    T = x_ref.shape[0]
    H4 = 4 * HIDDEN

    # sigmoid(z) = 0.5 * tanh(z/2) + 0.5  ->  pre-scale i/f/o gate columns by 0.5 so a
    # single tanh over the whole gate vector serves all four gates (one EUP op type).
    # PyTorch LSTMCell gate order: i, f, g, o -> g occupies columns [2H, 3H).
    col = jax.lax.broadcasted_iota(jnp.int32, (1, H4), 1)
    is_g = (col >= 2 * HIDDEN) & (col < 3 * HIDDEN)
    scale = jnp.where(is_g, jnp.float32(1.0), jnp.float32(0.5))          # (1, 4H)

    # ---- one-time preprocessing (off the recurrence critical path) ----
    # Variational dropout on x applied directly; mask on h folded into W_hh rows:
    #   (h * m_h) @ W_hh^T == h @ (m_h[:, None] * W_hh^T)   (masks constant over t).
    x_masked = x_ref[...] * mx_ref[...]                                   # (T, D)
    xw_ref[...] = (jnp.dot(x_masked, wih_ref[...],
                           preferred_element_type=jnp.float32)
                   + b_ref[...]) * scale                                  # (T, 4H)

    # bf16 single-pass MXU matmul on the serial chain (deliberate numerics choice);
    # element-wise state math stays f32 (v5e has no bf16 VPU/EUP).
    whhb_ref[...] = (whh_ref[...] * mh_ref[...] * scale).astype(jnp.bfloat16)

    # Head weights/bias padded 15 -> 128 lanes once, so the heads matmul writes a
    # dense 128-lane output with no masked stores.
    whp_ref[...] = jnp.zeros_like(whp_ref)
    whp_ref[:, 0:N_HEADS] = wh_ref[...]
    bhp_ref[...] = jnp.zeros_like(bhp_ref)
    bhp_ref[:, 0:N_HEADS] = bh_ref[...]

    # ---- serial LSTM recurrence ----
    def step(t, carry):
        h, c = carry                                                      # (1, H) f32
        gates = xw_ref[pl.ds(t, 1), :] + jnp.dot(
            h.astype(jnp.bfloat16), whhb_ref[...],
            preferred_element_type=jnp.float32)                           # (1, 4H) f32

        t_all = jnp.tanh(gates)                      # one tanh for all four gates
        i = 0.5 * t_all[:, 0 * HIDDEN:1 * HIDDEN] + 0.5
        f = 0.5 * t_all[:, 1 * HIDDEN:2 * HIDDEN] + 0.5
        g =       t_all[:, 2 * HIDDEN:3 * HIDDEN]
        o = 0.5 * t_all[:, 3 * HIDDEN:4 * HIDDEN] + 0.5

        c_new = f * c + i * g
        h_new = o * jnp.tanh(c_new)

        hh_ref[pl.ds(t, 1), :] = h_new               # keep history in VMEM
        return (h_new, c_new)

    h0 = jnp.zeros((1, HIDDEN), jnp.float32)
    c0 = jnp.zeros((1, HIDDEN), jnp.float32)
    # Fully unrolled (T small & static). If T grows (>=64), cap the unroll (e.g. 8).
    hT, cT = jax.lax.fori_loop(0, T, step, (h0, c0), unroll=True)
    hT_ref[...] = hT
    cT_ref[...] = cT

    # ---- fused MtFc heads: (T, H) @ (H, 128) + b, single lane-dense store ----
    out_ref[...] = (jnp.dot(hh_ref[...], whp_ref[...],
                            preferred_element_type=jnp.float32)
                    + bhp_ref[...])


def rnn_model2_forward(X, mask_x, mask_h, wih_t, whh_t, b_lstm, w_heads, b_heads):
    """X: (T, 1, D) float32 (time-major, batch 1).

    Returns (step, experience, rsd, s, (h_T, c_T))  -- the last tuple is what the
    PyTorch module stashes in self.last_state for the stateful=True path.
    """
    T, B, D = X.shape
    assert B == 1
    x2d = X.reshape(T, D)
    mask_h_col = mask_h.reshape(HIDDEN, 1)    # column form for the in-kernel row fold

    heads_p, h_T, c_T = pl.pallas_call(
        fused_rnn_kernel,
        out_shape=(jax.ShapeDtypeStruct((T, HEAD_PAD), jnp.float32),
                   jax.ShapeDtypeStruct((1, HIDDEN), jnp.float32),
                   jax.ShapeDtypeStruct((1, HIDDEN), jnp.float32)),
        in_specs=[pl.BlockSpec(memory_space=pltpu.MemorySpace.VMEM)] * 8,
        out_specs=(pl.BlockSpec(memory_space=pltpu.MemorySpace.VMEM),) * 3,
        scratch_shapes=[pltpu.VMEM((T, 4 * HIDDEN), jnp.float32),     # xw
                        pltpu.VMEM((T, HIDDEN), jnp.float32),         # h history
                        pltpu.VMEM((HIDDEN, 4 * HIDDEN), jnp.bfloat16),  # folded W_hh
                        pltpu.VMEM((HIDDEN, HEAD_PAD), jnp.float32),  # padded W_heads
                        pltpu.VMEM((1, HEAD_PAD), jnp.float32)],      # padded b_heads
    )(x2d, mask_x, mask_h_col, wih_t, whh_t, b_lstm, w_heads, b_heads)

    step = heads_p[:, 0:11]
    experience = heads_p[:, 11:13]
    rsd = heads_p[:, 13:14]
    s = heads_p[:, 14:15]
    return step, experience, rsd, s, (h_T, c_T)


if __name__ == "__main__":
    T, D = 8, 16  # seq length, input_size

    key = jax.random.PRNGKey(0)
    ks = jax.random.split(key, 16)

    # --- LSTMCell params (PyTorch init: U(-1/sqrt(H), 1/sqrt(H))) ---
    kH = 1.0 / jnp.sqrt(jnp.float32(HIDDEN))
    w_ih = jax.random.uniform(ks[0], (4 * HIDDEN, D), jnp.float32, -kH, kH)
    w_hh = jax.random.uniform(ks[1], (4 * HIDDEN, HIDDEN), jnp.float32, -kH, kH)
    b_ih = jax.random.uniform(ks[2], (4 * HIDDEN,), jnp.float32, -kH, kH)
    b_hh = jax.random.uniform(ks[3], (4 * HIDDEN,), jnp.float32, -kH, kH)
    wih_t = w_ih.T                                   # (D, 4H)
    whh_t = w_hh.T                                   # (H, 4H)
    b_lstm = (b_ih + b_hh)[None, :]                  # (1, 4H)

    # --- MtFc params: fc1 128->11, fc2 128->2, fc3 128->1, fc4 128->1 ---
    kL = 1.0 / jnp.sqrt(jnp.float32(HIDDEN))
    w1 = jax.random.uniform(ks[4], (11, HIDDEN), jnp.float32, -kL, kL)
    w2 = jax.random.uniform(ks[5], (2, HIDDEN), jnp.float32, -kL, kL)
    w3 = jax.random.uniform(ks[6], (1, HIDDEN), jnp.float32, -kL, kL)
    w4 = jax.random.uniform(ks[7], (1, HIDDEN), jnp.float32, -kL, kL)
    b1 = jax.random.uniform(ks[8], (11,), jnp.float32, -kL, kL)
    b2 = jax.random.uniform(ks[9], (2,), jnp.float32, -kL, kL)
    b3 = jax.random.uniform(ks[10], (1,), jnp.float32, -kL, kL)
    b4 = jax.random.uniform(ks[11], (1,), jnp.float32, -kL, kL)
    w_heads = jnp.concatenate([w1.T, w2.T, w3.T, w4.T], axis=1)   # (128, 15)
    b_heads = jnp.concatenate([b1, b2, b3, b4])[None, :]          # (1, 15)

    # --- variational dropout masks: nn.Dropout(p=0.2)(ones), sampled ONCE per forward
    #     (as in the PyTorch module: same mask for every timestep) ---
    keep = 0.8
    mask_x = (jax.random.bernoulli(ks[12], keep, (1, D)).astype(jnp.float32) / keep)
    mask_h = (jax.random.bernoulli(ks[13], keep, (1, HIDDEN)).astype(jnp.float32) / keep)

    # --- input sequence X: (T, 1, D) ---
    X = jax.random.normal(ks[14], (T, 1, D), jnp.float32)

    fwd = jax.jit(rnn_model2_forward)
    step, experience, rsd, s, last_state = fwd(X, mask_x, mask_h, wih_t, whh_t,
                                               b_lstm, w_heads, b_heads)
    jax.block_until_ready((step, experience, rsd, s, last_state))

    assert step.shape == (T, 11)
    assert experience.shape == (T, 2)
    assert rsd.shape == (T, 1)
    assert s.shape == (T, 1)
    assert last_state[0].shape == (1, HIDDEN)
    assert last_state[1].shape == (1, HIDDEN)
    print("KERNEL_OK")
</pallas_src>

<mosaic_0001>
module attributes {stable_mosaic.version = 11 : i64} {
  func.func @fused_rnn_kernel(%arg0: memref<8x16xf32, #tpu.memory_space<vmem>>, %arg1: memref<1x16xf32, #tpu.memory_space<vmem>>, %arg2: memref<128x1xf32, #tpu.memory_space<vmem>>, %arg3: memref<16x512xf32, #tpu.memory_space<vmem>>, %arg4: memref<128x512xf32, #tpu.memory_space<vmem>>, %arg5: memref<1x512xf32, #tpu.memory_space<vmem>>, %arg6: memref<128x15xf32, #tpu.memory_space<vmem>>, %arg7: memref<1x15xf32, #tpu.memory_space<vmem>>, %arg8: memref<8x128xf32, #tpu.memory_space<vmem>>, %arg9: memref<1x128xf32, #tpu.memory_space<vmem>>, %arg10: memref<1x128xf32, #tpu.memory_space<vmem>>, %arg11: memref<8x512xf32, #tpu.memory_space<vmem>>, %arg12: memref<8x128xf32, #tpu.memory_space<vmem>>, %arg13: memref<128x512xbf16, #tpu.memory_space<vmem>>, %arg14: memref<128x128xf32, #tpu.memory_space<vmem>>, %arg15: memref<1x128xf32, #tpu.memory_space<vmem>>) attributes {dimension_semantics = [], scalar_prefetch = 0 : i64, scratch_operands = 5 : i64, tpu.core_type = #tpu.core_type<tc>} {
    %0 = tpu.iota {dimensions = array<i32: 1>} : vector<1x512xi32>
    %c256_i32 = arith.constant 256 : i32
    %1 = vector.broadcast %c256_i32 : i32 to vector<1x512xi32>
    %2 = arith.cmpi sge, %0, %1 : vector<1x512xi32>
    %c384_i32 = arith.constant 384 : i32
    %3 = vector.broadcast %c384_i32 : i32 to vector<1x512xi32>
    %4 = arith.cmpi slt, %0, %3 : vector<1x512xi32>
    %5 = arith.andi %2, %4 : vector<1x512xi1>
    %cst = arith.constant 1.000000e+00 : f32
    %cst_0 = arith.constant 5.000000e-01 : f32
    %6 = vector.broadcast %cst : f32 to vector<1x512xf32>
    %7 = vector.broadcast %cst_0 : f32 to vector<1x512xf32>
    %8 = arith.select %5, %6, %7 : vector<1x512xi1>, vector<1x512xf32>
    %c0 = arith.constant 0 : index
    %c0_1 = arith.constant 0 : index
    %9 = vector.load %arg0[%c0, %c0_1] : memref<8x16xf32, #tpu.memory_space<vmem>>, vector<8x16xf32>
    %c0_2 = arith.constant 0 : index
    %c0_3 = arith.constant 0 : index
    %10 = vector.load %arg1[%c0_2, %c0_3] : memref<1x16xf32, #tpu.memory_space<vmem>>, vector<1x16xf32>
    %11 = vector.broadcast %10 : vector<1x16xf32> to vector<8x16xf32>
    %12 = arith.mulf %9, %11 : vector<8x16xf32>
    %c0_4 = arith.constant 0 : index
    %c0_5 = arith.constant 0 : index
    %13 = vector.load %arg3[%c0_4, %c0_5] : memref<16x512xf32, #tpu.memory_space<vmem>>, vector<16x512xf32>
    %cst_6 = arith.constant dense<0.000000e+00> : vector<8x512xf32>
    %14 = tpu.matmul %12, %13, %cst_6 {dimension_numbers = #tpu.dot_dimension_numbers<[1], [0], [0], [1], [0, 0, 1, 1], [], []>} : vector<8x16xf32>, vector<16x512xf32>, vector<8x512xf32> -> vector<8x512xf32>
    %c0_7 = arith.constant 0 : index
    %c0_8 = arith.constant 0 : index
    %15 = vector.load %arg5[%c0_7, %c0_8] : memref<1x512xf32, #tpu.memory_space<vmem>>, vector<1x512xf32>
    %16 = vector.broadcast %15 : vector<1x512xf32> to vector<8x512xf32>
    %17 = arith.addf %14, %16 : vector<8x512xf32>
    %18 = vector.broadcast %8 : vector<1x512xf32> to vector<8x512xf32>
    %19 = arith.mulf %17, %18 : vector<8x512xf32>
    %c0_9 = arith.constant 0 : index
    %c0_10 = arith.constant 0 : index
    %20 = vector.load %arg11[%c0_9, %c0_10] : memref<8x512xf32, #tpu.memory_space<vmem>>, vector<8x512xf32>
    tpu.vector_store %arg11[%c0_9, %c0_10], %19 {strides = array<i32>} : memref<8x512xf32, #tpu.memory_space<vmem>>, vector<8x512xf32>,
    %c0_11 = arith.constant 0 : index
    %c0_12 = arith.constant 0 : index
    %21 = vector.load %arg4[%c0_11, %c0_12] : memref<128x512xf32, #tpu.memory_space<vmem>>, vector<128x512xf32>
    %c0_13 = arith.constant 0 : index
    %c0_14 = arith.constant 0 : index
    %22 = vector.load %arg2[%c0_13, %c0_14] : memref<128x1xf32, #tpu.memory_space<vmem>>, vector<128x1xf32>
    %23 = vector.broadcast %22 : vector<128x1xf32> to vector<128x512xf32>
    %24 = arith.mulf %21, %23 : vector<128x512xf32>
    %25 = vector.broadcast %8 : vector<1x512xf32> to vector<128x512xf32>
    %26 = arith.mulf %24, %25 : vector<128x512xf32>
    %27 = arith.truncf %26 : vector<128x512xf32> to vector<128x512xbf16>
    %c0_15 = arith.constant 0 : index
    %c0_16 = arith.constant 0 : index
    %28 = vector.load %arg13[%c0_15, %c0_16] : memref<128x512xbf16, #tpu.memory_space<vmem>>, vector<128x512xbf16>
    tpu.vector_store %arg13[%c0_15, %c0_16], %27 {strides = array<i32>} : memref<128x512xbf16, #tpu.memory_space<vmem>>, vector<128x512xbf16>,
    %cst_17 = arith.constant 0.000000e+00 : f32
    %29 = vector.broadcast %cst_17 : f32 to vector<128x128xf32>
    %c0_18 = arith.constant 0 : index
    %c0_19 = arith.constant 0 : index
    %30 = vector.load %arg14[%c0_18, %c0_19] : memref<128x128xf32, #tpu.memory_space<vmem>>, vector<128x128xf32>
    tpu.vector_store %arg14[%c0_18, %c0_19], %29 {strides = array<i32>} : memref<128x128xf32, #tpu.memory_space<vmem>>, vector<128x128xf32>,
    %c0_20 = arith.constant 0 : index
    %c0_21 = arith.constant 0 : index
    %31 = vector.load %arg6[%c0_20, %c0_21] : memref<128x15xf32, #tpu.memory_space<vmem>>, vector<128x15xf32>
    %c0_22 = arith.constant 0 : index
    %c0_23 = arith.constant 0 : index
    %32 = vector.load %arg14[%c0_22, %c0_23] : memref<128x128xf32, #tpu.memory_space<vmem>>, vector<128x15xf32>
    tpu.vector_store %arg14[%c0_22, %c0_23], %31 {strides = array<i32>} : memref<128x128xf32, #tpu.memory_space<vmem>>, vector<128x15xf32>,
    %cst_24 = arith.constant 0.000000e+00 : f32
    %33 = vector.broadcast %cst_24 : f32 to vector<1x128xf32>
    %c0_25 = arith.constant 0 : index
    %c0_26 = arith.constant 0 : index
    %34 = vector.load %arg15[%c0_25, %c0_26] : memref<1x128xf32, #tpu.memory_space<vmem>>, vector<1x128xf32>
    tpu.vector_store %arg15[%c0_25, %c0_26], %33 {strides = array<i32>} : memref<1x128xf32, #tpu.memory_space<vmem>>, vector<1x128xf32>,
    %c0_27 = arith.constant 0 : index
    %c0_28 = arith.constant 0 : index
    %35 = vector.load %arg7[%c0_27, %c0_28] : memref<1x15xf32, #tpu.memory_space<vmem>>, vector<1x15xf32>
    %c0_29 = arith.constant 0 : index
    %c0_30 = arith.constant 0 : index
    %36 = vector.load %arg15[%c0_29, %c0_30] : memref<1x128xf32, #tpu.memory_space<vmem>>, vector<1x15xf32>
    tpu.vector_store %arg15[%c0_29, %c0_30], %35 {strides = array<i32>} : memref<1x128xf32, #tpu.memory_space<vmem>>, vector<1x15xf32>,
    %cst_31 = arith.constant 0.000000e+00 : f32
    %37 = vector.broadcast %cst_31 : f32 to vector<1x128xf32>
    %cst_32 = arith.constant 0.000000e+00 : f32
    %38 = vector.broadcast %cst_32 : f32 to vector<1x128xf32>
    %c0_i32 = arith.constant 0 : i32
    %39 = arith.index_cast %c0_i32 : i32 to index
    %c0_33 = arith.constant 0 : index
    %40 = vector.load %arg11[%39, %c0_33] : memref<8x512xf32, #tpu.memory_space<vmem>>, vector<1x512xf32>
    %41 = arith.truncf %37 : vector<1x128xf32> to vector<1x128xbf16>
    %c0_34 = arith.constant 0 : index
    %c0_35 = arith.constant 0 : index
    %42 = vector.load %arg13[%c0_34, %c0_35] : memref<128x512xbf16, #tpu.memory_space<vmem>>, vector<128x512xbf16>
    %cst_36 = arith.constant dense<0.000000e+00> : vector<1x512xf32>
    %43 = tpu.matmul %41, %42, %cst_36 {dimension_numbers = #tpu.dot_dimension_numbers<[1], [0], [0], [1], [0, 0, 1, 1], [], []>} : vector<1x128xbf16>, vector<128x512xbf16>, vector<1x512xf32> -> vector<1x512xf32>
    %44 = arith.addf %40, %43 : vector<1x512xf32>
    %45 = math.tanh %44 : vector<1x512xf32>
    %46 = vector.extract_strided_slice %45 {offsets = [0, 0], sizes = [1, 128], strides = [1, 1]} : vector<1x512xf32> to vector<1x128xf32>
    %cst_37 = arith.constant 5.000000e-01 : f32
    %47 = vector.broadcast %cst_37 : f32 to vector<1x128xf32>
    %48 = arith.mulf %47, %46 : vector<1x128xf32>
    %cst_38 = arith.constant 5.000000e-01 : f32
    %49 = vector.broadcast %cst_38 : f32 to vector<1x128xf32>
    %50 = arith.addf %48, %49 : vector<1x128xf32>
    %51 = vector.extract_strided_slice %45 {offsets = [0, 128], sizes = [1, 128], strides = [1, 1]} : vector<1x512xf32> to vector<1x128xf32>
    %cst_39 = arith.constant 5.000000e-01 : f32
    %52 = vector.broadcast %cst_39 : f32 to vector<1x128xf32>
    %53 = arith.mulf %52, %51 : vector<1x128xf32>
    %cst_40 = arith.constant 5.000000e-01 : f32
    %54 = vector.broadcast %cst_40 : f32 to vector<1x128xf32>
    %55 = arith.addf %53, %54 : vector<1x128xf32>
    %56 = vector.extract_strided_slice %45 {offsets = [0, 256], sizes = [1, 128], strides = [1, 1]} : vector<1x512xf32> to vector<1x128xf32>
    %57 = vector.extract_strided_slice %45 {offsets = [0, 384], sizes = [1, 128], strides = [1, 1]} : vector<1x512xf32> to vector<1x128xf32>
    %cst_41 = arith.constant 5.000000e-01 : f32
    %58 = vector.broadcast %cst_41 : f32 to vector<1x128xf32>
    %59 = arith.mulf %58, %57 : vector<1x128xf32>
    %cst_42 = arith.constant 5.000000e-01 : f32
    %60 = vector.broadcast %cst_42 : f32 to vector<1x128xf32>
    %61 = arith.addf %59, %60 : vector<1x128xf32>
    %62 = arith.mulf %55, %38 : vector<1x128xf32>
    %63 = arith.mulf %50, %56 : vector<1x128xf32>
    %64 = arith.addf %62, %63 : vector<1x128xf32>
    %65 = math.tanh %64 : vector<1x128xf32>
    %66 = arith.mulf %61, %65 : vector<1x128xf32>
    %67 = arith.index_cast %c0_i32 : i32 to index
    %c0_43 = arith.constant 0 : index
    %68 = vector.load %arg12[%67, %c0_43] : memref<8x128xf32, #tpu.memory_space<vmem>>, vector<1x128xf32>
    tpu.vector_store %arg12[%67, %c0_43], %66 {strides = array<i32>} : memref<8x128xf32, #tpu.memory_space<vmem>>, vector<1x128xf32>,
    %c1_i32 = arith.constant 1 : i32
    %69 = arith.index_cast %c1_i32 : i32 to index
    %c0_44 = arith.constant 0 : index
    %70 = vector.load %arg11[%69, %c0_44] : memref<8x512xf32, #tpu.memory_space<vmem>>, vector<1x512xf32>
    %71 = arith.truncf %66 : vector<1x128xf32> to vector<1x128xbf16>
    %c0_45 = arith.constant 0 : index
    %c0_46 = arith.constant 0 : index
    %72 = vector.load %arg13[%c0_45, %c0_46] : memref<128x512xbf16, #tpu.memory_space<vmem>>, vector<128x512xbf16>
    %cst_47 = arith.constant dense<0.000000e+00> : vector<1x512xf32>
    %73 = tpu.matmul %71, %72, %cst_47 {dimension_numbers = #tpu.dot_dimension_numbers<[1], [0], [0], [1], [0, 0, 1, 1], [], []>} : vector<1x128xbf16>, vector<128x512xbf16>, vector<1x512xf32> -> vector<1x512xf32>
    %74 = arith.addf %70, %73 : vector<1x512xf32>
    %75 = math.tanh %74 : vector<1x512xf32>
    %76 = vector.extract_strided_slice %75 {offsets = [0, 0], sizes = [1, 128], strides = [1, 1]} : vector<1x512xf32> to vector<1x128xf32>
    %cst_48 = arith.constant 5.000000e-01 : f32
    %77 = vector.broadcast %cst_48 : f32 to vector<1x128xf32>
    %78 = arith.mulf %77, %76 : vector<1x128xf32>
    %cst_49 = arith.constant 5.000000e-01 : f32
    %79 = vector.broadcast %cst_49 : f32 to vector<1x128xf32>
    %80 = arith.addf %78, %79 : vector<1x128xf32>
    %81 = vector.extract_strided_slice %75 {offsets = [0, 128], sizes = [1, 128], strides = [1, 1]} : vector<1x512xf32> to vector<1x128xf32>
    %cst_50 = arith.constant 5.000000e-01 : f32
    %82 = vector.broadcast %cst_50 : f32 to vector<1x128xf32>
    %83 = arith.mulf %82, %81 : vector<1x128xf32>
    %cst_51 = arith.constant 5.000000e-01 : f32
    %84 = vector.broadcast %cst_51 : f32 to vector<1x128xf32>
    %85 = arith.addf %83, %84 : vector<1x128xf32>
    %86 = vector.extract_strided_slice %75 {offsets = [0, 256], sizes = [1, 128], strides = [1, 1]} : vector<1x512xf32> to vector<1x128xf32>
    %87 = vector.extract_strided_slice %75 {offsets = [0, 384], sizes = [1, 128], strides = [1, 1]} : vector<1x512xf32> to vector<1x128xf32>
    %cst_52 = arith.constant 5.000000e-01 : f32
    %88 = vector.broadcast %cst_52 : f32 to vector<1x128xf32>
    %89 = arith.mulf %88, %87 : vector<1x128xf32>
    %cst_53 = arith.constant 5.000000e-01 : f32
    %90 = vector.broadcast %cst_53 : f32 to vector<1x128xf32>
    %91 = arith.addf %89, %90 : vector<1x128xf32>
    %92 = arith.mulf %85, %64 : vector<1x128xf32>
    %93 = arith.mulf %80, %86 : vector<1x128xf32>
    %94 = arith.addf %92, %93 : vector<1x128xf32>
    %95 = math.tanh %94 : vector<1x128xf32>
    %96 = arith.mulf %91, %95 : vector<1x128xf32>
    %97 = arith.index_cast %c1_i32 : i32 to index
    %c0_54 = arith.constant 0 : index
    %98 = vector.load %arg12[%97, %c0_54] : memref<8x128xf32, #tpu.memory_space<vmem>>, vector<1x128xf32>
    tpu.vector_store %arg12[%97, %c0_54], %96 {strides = array<i32>} : memref<8x128xf32, #tpu.memory_space<vmem>>, vector<1x128xf32>,
    %c2_i32 = arith.constant 2 : i32
    %99 = arith.index_cast %c2_i32 : i32 to index
    %c0_55 = arith.constant 0 : index
    %100 = vector.load %arg11[%99, %c0_55] : memref<8x512xf32, #tpu.memory_space<vmem>>, vector<1x512xf32>
    %101 = arith.truncf %96 : vector<1x128xf32> to vector<1x128xbf16>
    %c0_56 = arith.constant 0 : index
    %c0_57 = arith.constant 0 : index
    %102 = vector.load %arg13[%c0_56, %c0_57] : memref<128x512xbf16, #tpu.memory_space<vmem>>, vector<128x512xbf16>
    %cst_58 = arith.constant dense<0.000000e+00> : vector<1x512xf32>
    %103 = tpu.matmul %101, %102, %cst_58 {dimension_numbers = #tpu.dot_dimension_numbers<[1], [0], [0], [1], [0, 0, 1, 1], [], []>} : vector<1x128xbf16>, vector<128x512xbf16>, vector<1x512xf32> -> vector<1x512xf32>
    %104 = arith.addf %100, %103 : vector<1x512xf32>
    %105 = math.tanh %104 : vector<1x512xf32>
    %106 = vector.extract_strided_slice %105 {offsets = [0, 0], sizes = [1, 128], strides = [1, 1]} : vector<1x512xf32> to vector<1x128xf32>
    %cst_59 = arith.constant 5.000000e-01 : f32
    %107 = vector.broadcast %cst_59 : f32 to vector<1x128xf32>
    %108 = arith.mulf %107, %106 : vector<1x128xf32>
    %cst_60 = arith.constant 5.000000e-01 : f32
    %109 = vector.broadcast %cst_60 : f32 to vector<1x128xf32>
    %110 = arith.addf %108, %109 : vector<1x128xf32>
    %111 = vector.extract_strided_slice %105 {offsets = [0, 128], sizes = [1, 128], strides = [1, 1]} : vector<1x512xf32> to vector<1x128xf32>
    %cst_61 = arith.constant 5.000000e-01 : f32
    %112 = vector.broadcast %cst_61 : f32 to vector<1x128xf32>
    %113 = arith.mulf %112, %111 : vector<1x128xf32>
    %cst_62 = arith.constant 5.000000e-01 : f32
    %114 = vector.broadcast %cst_62 : f32 to vector<1x128xf32>
    %115 = arith.addf %113, %114 : vector<1x128xf32>
    %116 = vector.extract_strided_slice %105 {offsets = [0, 256], sizes = [1, 128], strides = [1, 1]} : vector<1x512xf32> to vector<1x128xf32>
    %117 = vector.extract_strided_slice %105 {offsets = [0, 384], sizes = [1, 128], strides = [1, 1]} : vector<1x512xf32> to vector<1x128xf32>
    %cst_63 = arith.constant 5.000000e-01 : f32
    %118 = vector.broadcast %cst_63 : f32 to vector<1x128xf32>
    %119 = arith.mulf %118, %117 : vector<1x128xf32>
    %cst_64 = arith.constant 5.000000e-01 : f32
    %120 = vector.broadcast %cst_64 : f32 to vector<1x128xf32>
    %121 = arith.addf %119, %120 : vector<1x128xf32>
    %122 = arith.mulf %115, %94 : vector<1x128xf32>
    %123 = arith.mulf %110, %116 : vector<1x128xf32>
    %124 = arith.addf %122, %123 : vector<1x128xf32>
    %125 = math.tanh %124 : vector<1x128xf32>
    %126 = arith.mulf %121, %125 : vector<1x128xf32>
    %127 = arith.index_cast %c2_i32 : i32 to index
    %c0_65 = arith.constant 0 : index
    %128 = vector.load %arg12[%127, %c0_65] : memref<8x128xf32, #tpu.memory_space<vmem>>, vector<1x128xf32>
    tpu.vector_store %arg12[%127, %c0_65], %126 {strides = array<i32>} : memref<8x128xf32, #tpu.memory_space<vmem>>, vector<1x128xf32>,
    %c3_i32 = arith.constant 3 : i32
    %129 = arith.index_cast %c3_i32 : i32 to index
    %c0_66 = arith.constant 0 : index
    %130 = vector.load %arg11[%129, %c0_66] : memref<8x512xf32, #tpu.memory_space<vmem>>, vector<1x512xf32>
    %131 = arith.truncf %126 : vector<1x128xf32> to vector<1x128xbf16>
    %c0_67 = arith.constant 0 : index
    %c0_68 = arith.constant 0 : index
    %132 = vector.load %arg13[%c0_67, %c0_68] : memref<128x512xbf16, #tpu.memory_space<vmem>>, vector<128x512xbf16>
    %cst_69 = arith.constant dense<0.000000e+00> : vector<1x512xf32>
    %133 = tpu.matmul %131, %132, %cst_69 {dimension_numbers = #tpu.dot_dimension_numbers<[1], [0], [0], [1], [0, 0, 1, 1], [], []>} : vector<1x128xbf16>, vector<128x512xbf16>, vector<1x512xf32> -> vector<1x512xf32>
    %134 = arith.addf %130, %133 : vector<1x512xf32>
    %135 = math.tanh %134 : vector<1x512xf32>
    %136 = vector.extract_strided_slice %135 {offsets = [0, 0], sizes = [1, 128], strides = [1, 1]} : vector<1x512xf32> to vector<1x128xf32>
    %cst_70 = arith.constant 5.000000e-01 : f32
    %137 = vector.broadcast %cst_70 : f32 to vector<1x128xf32>
    %138 = arith.mulf %137, %136 : vector<1x128xf32>
    %cst_71 = arith.constant 5.000000e-01 : f32
    %139 = vector.broadcast %cst_71 : f32 to vector<1x128xf32>
    %140 = arith.addf %138, %139 : vector<1x128xf32>
    %141 = vector.extract_strided_slice %135 {offsets = [0, 128], sizes = [1, 128], strides = [1, 1]} : vector<1x512xf32> to vector<1x128xf32>
    %cst_72 = arith.constant 5.000000e-01 : f32
    %142 = vector.broadcast %cst_72 : f32 to vector<1x128xf32>
    %143 = arith.mulf %142, %141 : vector<1x128xf32>
    %cst_73 = arith.constant 5.000000e-01 : f32
    %144 = vector.broadcast %cst_73 : f32 to vector<1x128xf32>
    %145 = arith.addf %143, %144 : vector<1x128xf32>
    %146 = vector.extract_strided_slice %135 {offsets = [0, 256], sizes = [1, 128], strides = [1, 1]} : vector<1x512xf32> to vector<1x128xf32>
    %147 = vector.extract_strided_slice %135 {offsets = [0, 384], sizes = [1, 128], strides = [1, 1]} : vector<1x512xf32> to vector<1x128xf32>
    %cst_74 = arith.constant 5.000000e-01 : f32
    %148 = vector.broadcast %cst_74 : f32 to vector<1x128xf32>
    %149 = arith.mulf %148, %147 : vector<1x128xf32>
    %cst_75 = arith.constant 5.000000e-01 : f32
    %150 = vector.broadcast %cst_75 : f32 to vector<1x128xf32>
    %151 = arith.addf %149, %150 : vector<1x128xf32>
    %152 = arith.mulf %145, %124 : vector<1x128xf32>
    %153 = arith.mulf %140, %146 : vector<1x128xf32>
    %154 = arith.addf %152, %153 : vector<1x128xf32>
    %155 = math.tanh %154 : vector<1x128xf32>
    %156 = arith.mulf %151, %155 : vector<1x128xf32>
    %157 = arith.index_cast %c3_i32 : i32 to index
    %c0_76 = arith.constant 0 : index
    %158 = vector.load %arg12[%157, %c0_76] : memref<8x128xf32, #tpu.memory_space<vmem>>, vector<1x128xf32>
    tpu.vector_store %arg12[%157, %c0_76], %156 {strides = array<i32>} : memref<8x128xf32, #tpu.memory_space<vmem>>, vector<1x128xf32>,
    %c4_i32 = arith.constant 4 : i32
    %159 = arith.index_cast %c4_i32 : i32 to index
    %c0_77 = arith.constant 0 : index
    %160 = vector.load %arg11[%159, %c0_77] : memref<8x512xf32, #tpu.memory_space<vmem>>, vector<1x512xf32>
    %161 = arith.truncf %156 : vector<1x128xf32> to vector<1x128xbf16>
    %c0_78 = arith.constant 0 : index
    %c0_79 = arith.constant 0 : index
    %162 = vector.load %arg13[%c0_78, %c0_79] : memref<128x512xbf16, #tpu.memory_space<vmem>>, vector<128x512xbf16>
    %cst_80 = arith.constant dense<0.000000e+00> : vector<1x512xf32>
    %163 = tpu.matmul %161, %162, %cst_80 {dimension_numbers = #tpu.dot_dimension_numbers<[1], [0], [0], [1], [0, 0, 1, 1], [], []>} : vector<1x128xbf16>, vector<128x512xbf16>, vector<1x512xf32> -> vector<1x512xf32>
    %164 = arith.addf %160, %163 : vector<1x512xf32>
    %165 = math.tanh %164 : vector<1x512xf32>
    %166 = vector.extract_strided_slice %165 {offsets = [0, 0], sizes = [1, 128], strides = [1, 1]} : vector<1x512xf32> to vector<1x128xf32>
    %cst_81 = arith.constant 5.000000e-01 : f32
    %167 = vector.broadcast %cst_81 : f32 to vector<1x128xf32>
    %168 = arith.mulf %167, %166 : vector<1x128xf32>
    %cst_82 = arith.constant 5.000000e-01 : f32
    %169 = vector.broadcast %cst_82 : f32 to vector<1x128xf32>
    %170 = arith.addf %168, %169 : vector<1x128xf32>
    %171 = vector.extract_strided_slice %165 {offsets = [0, 128], sizes = [1, 128], strides = [1, 1]} : vector<1x512xf32> to vector<1x128xf32>
    %cst_83 = arith.constant 5.000000e-01 : f32
    %172 = vector.broadcast %cst_83 : f32 to vector<1x128xf32>
    %173 = arith.mulf %172, %171 : vector<1x128xf32>
    %cst_84 = arith.constant 5.000000e-01 : f32
    %174 = vector.broadcast %cst_84 : f32 to vector<1x128xf32>
    %175 = arith.addf %173, %174 : vector<1x128xf32>
    %176 = vector.extract_strided_slice %165 {offsets = [0, 256], sizes = [1, 128], strides = [1, 1]} : vector<1x512xf32> to vector<1x128xf32>
    %177 = vector.extract_strided_slice %165 {offsets = [0, 384], sizes = [1, 128], strides = [1, 1]} : vector<1x512xf32> to vector<1x128xf32>
    %cst_85 = arith.constant 5.000000e-01 : f32
    %178 = vector.broadcast %cst_85 : f32 to vector<1x128xf32>
    %179 = arith.mulf %178, %177 : vector<1x128xf32>
    %cst_86 = arith.constant 5.000000e-01 : f32
    %180 = vector.broadcast %cst_86 : f32 to vector<1x128xf32>
    %181 = arith.addf %179, %180 : vector<1x128xf32>
    %182 = arith.mulf %175, %154 : vector<1x128xf32>
    %183 = arith.mulf %170, %176 : vector<1x128xf32>
    %184 = arith.addf %182, %183 : vector<1x128xf32>
    %185 = math.tanh %184 : vector<1x128xf32>
    %186 = arith.mulf %181, %185 : vector<1x128xf32>
    %187 = arith.index_cast %c4_i32 : i32 to index
    %c0_87 = arith.constant 0 : index
    %188 = vector.load %arg12[%187, %c0_87] : memref<8x128xf32, #tpu.memory_space<vmem>>, vector<1x128xf32>
    tpu.vector_store %arg12[%187, %c0_87], %186 {strides = array<i32>} : memref<8x128xf32, #tpu.memory_space<vmem>>, vector<1x128xf32>,
    %c5_i32 = arith.constant 5 : i32
    %189 = arith.index_cast %c5_i32 : i32 to index
    %c0_88 = arith.constant 0 : index
    %190 = vector.load %arg11[%189, %c0_88] : memref<8x512xf32, #tpu.memory_space<vmem>>, vector<1x512xf32>
    %191 = arith.truncf %186 : vector<1x128xf32> to vector<1x128xbf16>
    %c0_89 = arith.constant 0 : index
    %c0_90 = arith.constant 0 : index
    %192 = vector.load %arg13[%c0_89, %c0_90] : memref<128x512xbf16, #tpu.memory_space<vmem>>, vector<128x512xbf16>
    %cst_91 = arith.constant dense<0.000000e+00> : vector<1x512xf32>
    %193 = tpu.matmul %191, %192, %cst_91 {dimension_numbers = #tpu.dot_dimension_numbers<[1], [0], [0], [1], [0, 0, 1, 1], [], []>} : vector<1x128xbf16>, vector<128x512xbf16>, vector<1x512xf32> -> vector<1x512xf32>
    %194 = arith.addf %190, %193 : vector<1x512xf32>
    %195 = math.tanh %194 : vector<1x512xf32>
    %196 = vector.extract_strided_slice %195 {offsets = [0, 0], sizes = [1, 128], strides = [1, 1]} : vector<1x512xf32> to vector<1x128xf32>
    %cst_92 = arith.constant 5.000000e-01 : f32
    %197 = vector.broadcast %cst_92 : f32 to vector<1x128xf32>
    %198 = arith.mulf %197, %196 : vector<1x128xf32>
    %cst_93 = arith.constant 5.000000e-01 : f32
    %199 = vector.broadcast %cst_93 : f32 to vector<1x128xf32>
    %200 = arith.addf %198, %199 : vector<1x128xf32>
    %201 = vector.extract_strided_slice %195 {offsets = [0, 128], sizes = [1, 128], strides = [1, 1]} : vector<1x512xf32> to vector<1x128xf32>
    %cst_94 = arith.constant 5.000000e-01 : f32
    %202 = vector.broadcast %cst_94 : f32 to vector<1x128xf32>
    %203 = arith.mulf %202, %201 : vector<1x128xf32>
    %cst_95 = arith.constant 5.000000e-01 : f32
    %204 = vector.broadcast %cst_95 : f32 to vector<1x128xf32>
    %205 = arith.addf %203, %204 : vector<1x128xf32>
    %206 = vector.extract_strided_slice %195 {offsets = [0, 256], sizes = [1, 128], strides = [1, 1]} : vector<1x512xf32> to vector<1x128xf32>
    %207 = vector.extract_strided_slice %195 {offsets = [0, 384], sizes = [1, 128], strides = [1, 1]} : vector<1x512xf32> to vector<1x128xf32>
    %cst_96 = arith.constant 5.000000e-01 : f32
    %208 = vector.broadcast %cst_96 : f32 to vector<1x128xf32>
    %209 = arith.mulf %208, %207 : vector<1x128xf32>
    %cst_97 = arith.constant 5.000000e-01 : f32
    %210 = vector.broadcast %cst_97 : f32 to vector<1x128xf32>
    %211 = arith.addf %209, %210 : vector<1x128xf32>
    %212 = arith.mulf %205, %184 : vector<1x128xf32>
    %213 = arith.mulf %200, %206 : vector<1x128xf32>
    %214 = arith.addf %212, %213 : vector<1x128xf32>
    %215 = math.tanh %214 : vector<1x128xf32>
    %216 = arith.mulf %211, %215 : vector<1x128xf32>
    %217 = arith.index_cast %c5_i32 : i32 to index
    %c0_98 = arith.constant 0 : index
    %218 = vector.load %arg12[%217, %c0_98] : memref<8x128xf32, #tpu.memory_space<vmem>>, vector<1x128xf32>
    tpu.vector_store %arg12[%217, %c0_98], %216 {strides = array<i32>} : memref<8x128xf32, #tpu.memory_space<vmem>>, vector<1x128xf32>,
    %c6_i32 = arith.constant 6 : i32
    %219 = arith.index_cast %c6_i32 : i32 to index
    %c0_99 = arith.constant 0 : index
    %220 = vector.load %arg11[%219, %c0_99] : memref<8x512xf32, #tpu.memory_space<vmem>>, vector<1x512xf32>
    %221 = arith.truncf %216 : vector<1x128xf32> to vector<1x128xbf16>
    %c0_100 = arith.constant 0 : index
    %c0_101 = arith.constant 0 : index
    %222 = vector.load %arg13[%c0_100, %c0_101] : memref<128x512xbf16, #tpu.memory_space<vmem>>, vector<128x512xbf16>
    %cst_102 = arith.constant dense<0.000000e+00> : vector<1x512xf32>
    %223 = tpu.matmul %221, %222, %cst_102 {dimension_numbers = #tpu.dot_dimension_numbers<[1], [0], [0], [1], [0, 0, 1, 1], [], []>} : vector<1x128xbf16>, vector<128x512xbf16>, vector<1x512xf32> -> vector<1x512xf32>
    %224 = arith.addf %220, %223 : vector<1x512xf32>
    %225 = math.tanh %224 : vector<1x512xf32>
    %226 = vector.extract_strided_slice %225 {offsets = [0, 0], sizes = [1, 128], strides = [1, 1]} : vector<1x512xf32> to vector<1x128xf32>
    %cst_103 = arith.constant 5.000000e-01 : f32
    %227 = vector.broadcast %cst_103 : f32 to vector<1x128xf32>
    %228 = arith.mulf %227, %226 : vector<1x128xf32>
    %cst_104 = arith.constant 5.000000e-01 : f32
    %229 = vector.broadcast %cst_104 : f32 to vector<1x128xf32>
    %230 = arith.addf %228, %229 : vector<1x128xf32>
    %231 = vector.extract_strided_slice %225 {offsets = [0, 128], sizes = [1, 128], strides = [1, 1]} : vector<1x512xf32> to vector<1x128xf32>
    %cst_105 = arith.constant 5.000000e-01 : f32
    %232 = vector.broadcast %cst_105 : f32 to vector<1x128xf32>
    %233 = arith.mulf %232, %231 : vector<1x128xf32>
    %cst_106 = arith.constant 5.000000e-01 : f32
    %234 = vector.broadcast %cst_106 : f32 to vector<1x128xf32>
    %235 = arith.addf %233, %234 : vector<1x128xf32>
    %236 = vector.extract_strided_slice %225 {offsets = [0, 256], sizes = [1, 128], strides = [1, 1]} : vector<1x512xf32> to vector<1x128xf32>
    %237 = vector.extract_strided_slice %225 {offsets = [0, 384], sizes = [1, 128], strides = [1, 1]} : vector<1x512xf32> to vector<1x128xf32>
    %cst_107 = arith.constant 5.000000e-01 : f32
    %238 = vector.broadcast %cst_107 : f32 to vector<1x128xf32>
    %239 = arith.mulf %238, %237 : vector<1x128xf32>
    %cst_108 = arith.constant 5.000000e-01 : f32
    %240 = vector.broadcast %cst_108 : f32 to vector<1x128xf32>
    %241 = arith.addf %239, %240 : vector<1x128xf32>
    %242 = arith.mulf %235, %214 : vector<1x128xf32>
    %243 = arith.mulf %230, %236 : vector<1x128xf32>
    %244 = arith.addf %242, %243 : vector<1x128xf32>
    %245 = math.tanh %244 : vector<1x128xf32>
    %246 = arith.mulf %241, %245 : vector<1x128xf32>
    %247 = arith.index_cast %c6_i32 : i32 to index
    %c0_109 = arith.constant 0 : index
    %248 = vector.load %arg12[%247, %c0_109] : memref<8x128xf32, #tpu.memory_space<vmem>>, vector<1x128xf32>
    tpu.vector_store %arg12[%247, %c0_109], %246 {strides = array<i32>} : memref<8x128xf32, #tpu.memory_space<vmem>>, vector<1x128xf32>,
    %c7_i32 = arith.constant 7 : i32
    %249 = arith.index_cast %c7_i32 : i32 to index
    %c0_110 = arith.constant 0 : index
    %250 = vector.load %arg11[%249, %c0_110] : memref<8x512xf32, #tpu.memory_space<vmem>>, vector<1x512xf32>
    %251 = arith.truncf %246 : vector<1x128xf32> to vector<1x128xbf16>
    %c0_111 = arith.constant 0 : index
    %c0_112 = arith.constant 0 : index
    %252 = vector.load %arg13[%c0_111, %c0_112] : memref<128x512xbf16, #tpu.memory_space<vmem>>, vector<128x512xbf16>
    %cst_113 = arith.constant dense<0.000000e+00> : vector<1x512xf32>
    %253 = tpu.matmul %251, %252, %cst_113 {dimension_numbers = #tpu.dot_dimension_numbers<[1], [0], [0], [1], [0, 0, 1, 1], [], []>} : vector<1x128xbf16>, vector<128x512xbf16>, vector<1x512xf32> -> vector<1x512xf32>
    %254 = arith.addf %250, %253 : vector<1x512xf32>
    %255 = math.tanh %254 : vector<1x512xf32>
    %256 = vector.extract_strided_slice %255 {offsets = [0, 0], sizes = [1, 128], strides = [1, 1]} : vector<1x512xf32> to vector<1x128xf32>
    %cst_114 = arith.constant 5.000000e-01 : f32
    %257 = vector.broadcast %cst_114 : f32 to vector<1x128xf32>
    %258 = arith.mulf %257, %256 : vector<1x128xf32>
    %cst_115 = arith.constant 5.000000e-01 : f32
    %259 = vector.broadcast %cst_115 : f32 to vector<1x128xf32>
    %260 = arith.addf %258, %259 : vector<1x128xf32>
    %261 = vector.extract_strided_slice %255 {offsets = [0, 128], sizes = [1, 128], strides = [1, 1]} : vector<1x512xf32> to vector<1x128xf32>
    %cst_116 = arith.constant 5.000000e-01 : f32
    %262 = vector.broadcast %cst_116 : f32 to vector<1x128xf32>
    %263 = arith.mulf %262, %261 : vector<1x128xf32>
    %cst_117 = arith.constant 5.000000e-01 : f32
    %264 = vector.broadcast %cst_117 : f32 to vector<1x128xf32>
    %265 = arith.addf %263, %264 : vector<1x128xf32>
    %266 = vector.extract_strided_slice %255 {offsets = [0, 256], sizes = [1, 128], strides = [1, 1]} : vector<1x512xf32> to vector<1x128xf32>
    %267 = vector.extract_strided_slice %255 {offsets = [0, 384], sizes = [1, 128], strides = [1, 1]} : vector<1x512xf32> to vector<1x128xf32>
    %cst_118 = arith.constant 5.000000e-01 : f32
    %268 = vector.broadcast %cst_118 : f32 to vector<1x128xf32>
    %269 = arith.mulf %268, %267 : vector<1x128xf32>
    %cst_119 = arith.constant 5.000000e-01 : f32
    %270 = vector.broadcast %cst_119 : f32 to vector<1x128xf32>
    %271 = arith.addf %269, %270 : vector<1x128xf32>
    %272 = arith.mulf %265, %244 : vector<1x128xf32>
    %273 = arith.mulf %260, %266 : vector<1x128xf32>
    %274 = arith.addf %272, %273 : vector<1x128xf32>
    %275 = math.tanh %274 : vector<1x128xf32>
    %276 = arith.mulf %271, %275 : vector<1x128xf32>
    %277 = arith.index_cast %c7_i32 : i32 to index
    %c0_120 = arith.constant 0 : index
    %278 = vector.load %arg12[%277, %c0_120] : memref<8x128xf32, #tpu.memory_space<vmem>>, vector<1x128xf32>
    tpu.vector_store %arg12[%277, %c0_120], %276 {strides = array<i32>} : memref<8x128xf32, #tpu.memory_space<vmem>>, vector<1x128xf32>,
    %c8_i32 = arith.constant 8 : i32
    %c0_121 = arith.constant 0 : index
    %c0_122 = arith.constant 0 : index
    %279 = vector.load %arg9[%c0_121, %c0_122] : memref<1x128xf32, #tpu.memory_space<vmem>>, vector<1x128xf32>
    tpu.vector_store %arg9[%c0_121, %c0_122], %276 {strides = array<i32>} : memref<1x128xf32, #tpu.memory_space<vmem>>, vector<1x128xf32>,
    %c0_123 = arith.constant 0 : index
    %c0_124 = arith.constant 0 : index
    %280 = vector.load %arg10[%c0_123, %c0_124] : memref<1x128xf32, #tpu.memory_space<vmem>>, vector<1x128xf32>
    tpu.vector_store %arg10[%c0_123, %c0_124], %274 {strides = array<i32>} : memref<1x128xf32, #tpu.memory_space<vmem>>, vector<1x128xf32>,
    %c0_125 = arith.constant 0 : index
    %c0_126 = arith.constant 0 : index
    %281 = vector.load %arg12[%c0_125, %c0_126] : memref<8x128xf32, #tpu.memory_space<vmem>>, vector<8x128xf32>
    %c0_127 = arith.constant 0 : index
    %c0_128 = arith.constant 0 : index
    %282 = vector.load %arg14[%c0_127, %c0_128] : memref<128x128xf32, #tpu.memory_space<vmem>>, vector<128x128xf32>
    %cst_129 = arith.constant dense<0.000000e+00> : vector<8x128xf32>
    %283 = tpu.matmul %281, %282, %cst_129 {dimension_numbers = #tpu.dot_dimension_numbers<[1], [0], [0], [1], [0, 0, 1, 1], [], []>} : vector<8x128xf32>, vector<128x128xf32>, vector<8x128xf32> -> vector<8x128xf32>
    %c0_130 = arith.constant 0 : index
    %c0_131 = arith.constant 0 : index
    %284 = vector.load %arg15[%c0_130, %c0_131] : memref<1x128xf32, #tpu.memory_space<vmem>>, vector<1x128xf32>
    %285 = vector.broadcast %284 : vector<1x128xf32> to vector<8x128xf32>
    %286 = arith.addf %283, %285 : vector<8x128xf32>
    %c0_132 = arith.constant 0 : index
    %c0_133 = arith.constant 0 : index
    %287 = vector.load %arg8[%c0_132, %c0_133] : memref<8x128xf32, #tpu.memory_space<vmem>>, vector<8x128xf32>
    tpu.vector_store %arg8[%c0_132, %c0_133], %286 {strides = array<i32>} : memref<8x128xf32, #tpu.memory_space<vmem>>, vector<8x128xf32>,
    return
  }
}

</mosaic_0001>

<bundles_post_ra>
// kernel: rnn_model2_forward.1
= control target key start
LH: loop header
LB: loop body
LE: loop exit
PB: predicated region body
PF: predicated region fallthrough
CT: control target
= control target key end

     0   :  { %16 = vsyncpa [#allocation8], 0  ;;  %s4729_s0 = inlined_call_operand.vmem [shape: f32[8,16], index: 0, kind: input, shape index: {}]   ;;  %s4730_s1 = inlined_call_operand.vmem [shape: f32[1,16], index: 1, kind: input, shape index: {}]   ;;  %s4731_s2 = inlined_call_operand.vmem [shape: f32[128,1], index: 2, kind: input, shape index: {}]   ;;  %s4732_s3 = inlined_call_operand.vmem [shape: f32[16,512], index: 3, kind: input, shape index: {}]   ;;  %s4733_s4 = inlined_call_operand.hbm [shape: f32[128,512], index: 4, kind: input, shape index: {}]   ;;  %s4734_s5 = inlined_call_operand.vmem [shape: f32[1,512], index: 5, kind: input, shape index: {}]   ;;  %s4735_s6 = inlined_call_operand.vmem [shape: f32[128,15], index: 6, kind: input, shape index: {}]   ;;  %s4736_s7 = inlined_call_operand.vmem [shape: f32[1,15], index: 7, kind: input, shape index: {}]   ;;  %s4737_s8 = inlined_call_operand.vmem [shape: f32[8,128], index: 8, kind: output, shape index: {0}]   ;;  %s4738_s9 = inlined_call_operand.hbm [shape: f32[1,128], index: 9, kind: output, shape index: {1}]   ;;  %s4739_s10 = inlined_call_operand.hbm [shape: f32[1,128], index: 10, kind: output, shape index: {2}]  }
   0x1   :  { %17 = vsyncpa [#allocation9], 0 }
   0x2   :  { %18 = vsyncpa [#allocation12], 0  ;;  %s4090_s13 = smov [#allocation7]  }
   0x3   :  { %s32_s14 = sshll.u32 %s4090_s13, 4  ;;  %s33_s14 = int_to_ptr.vmem [resolvable:$true] %s32_s14 }
   0x4   :  { %s4032_s15 = scalar_lea.vmem %s33_s14, 8192  ;;  %p4037_p1 = scmp.lt.s32.totalorder %s33_s14, %s33_s14 }
   0x5   :  { %p4033_p0 = scmp.ne.s32.totalorder %s33_s14, %s4032_s15  ;;  %p4038_p2 = scmp.lt.s32.totalorder %s4032_s15, %s4032_s15 }
   0x7   :  { %p4039_p3 = por %p4038_p2, %p4037_p1 }
   0x9   :  { %p4040_p4 = pnand %p4039_p3, %p4033_p0 }
   0xb   :  { %4043 = shalt.err (!%p4040_p4)
}
   0xc   :  { %s4091_s16 = smov 512   ;;  %s4092_s17 = smov 32  }
   0xd   :  { %38 = dma.hbm_to_vmem [thread:$0]  %s4733_s4, 8192, %s33_s14, [#allocation8], %s4091_s16, %s4091_s16, %s4092_s17  }
   0xe   :  { %4084 = dma.done.wait [#allocation8], 8192  }
   0xf   :  { %4085 = vsyncadd [#allocation8], 4294959104  ;;  %v4093_v0 = vmov 0   ;;  %v4094_v1 = vmov 0.0   ;;  %v341_v2 = vld [vmem:[%s4731_s2 + $0x70] sm:$0xff]  ;;  %v339_v3 = vld [vmem:[%s4731_s2 + $0x60] sm:$0xff] }
  0x10   :  { %3990 = vset.pattern.permute.xlu1 %v4093_v0  ;;  %3989 = vset.pattern.permute.xlu0 %v4093_v0  ;;  %775 = vst [vmem:[#allocation5] sm:$0xff] %v4094_v1  ;;  %776 = vst [vmem:[#allocation5 + $0x8] sm:$0xff] %v4094_v1  ;;  %v342_v4 = vld [vmem:[%s4731_s2 + $0x78] sm:$0xff]  ;;  %v340_v5 = vld [vmem:[%s4731_s2 + $0x68] sm:$0xff]  ;;  %vm109_vm0 = vcmask 130048   ;;  %vm807_vm1 = vcmask 121856  }
  0x11   :  { %1053 = vmatprep.mubr.bf16.mxu0 %v4093_v0  ;;  %177 = vmatprep.mubr.f32.mxu1 %v4094_v1  ;;  %777 = vst [vmem:[#allocation5 + $0x10] sm:$0xff] %v4094_v1  ;;  %778 = vst [vmem:[#allocation5 + $0x18] sm:$0xff] %v4094_v1  ;;  %v84_v6 = vld [vmem:[%s4732_s3 + $0x28] sm:$0xff]  ;;  %v83_v7 = vld [vmem:[%s4732_s3 + $0x20] sm:$0xff]  ;;  %vm4096_vm2 = vmmov 0   ;;  %vm826_vm3 = vcmask 114688  }
  0x12   :  { %779 = vst [vmem:[#allocation5 + $0x20] sm:$0xff] %v4094_v1  ;;  %780 = vst [vmem:[#allocation5 + $0x28] sm:$0xff] %v4094_v1  ;;  %415 = vperm.xlu0 %3989, %v341_v2   ;;  %405 = vperm.xlu1 %3990, %v339_v3   ;;  %v338_v8 = vld [vmem:[%s4731_s2 + $0x58] sm:$0xff]  ;;  %v337_v9 = vld [vmem:[%s4731_s2 + $0x50] sm:$0xff]  ;;  %s4098_s12 = smov [#allocation11]  }
  0x13   :  { %781 = vst [vmem:[#allocation5 + $0x30] sm:$0xff] %v4094_v1  ;;  %782 = vst [vmem:[#allocation5 + $0x38] sm:$0xff] %v4094_v1  ;;  %141 = vmatprep.subr.mxu1 %v84_v6  ;;  %v80_v10 = vld [vmem:[%s4732_s3 + $0x8] sm:$0xff]  ;;  %v79_v11 = vld [vmem:[%s4732_s3] sm:$0xff]  ;;  %s3557_s13 = sshll.u32 %s4098_s12, 4  ;;  %s3558_s13 = int_to_ptr.vmem [resolvable:$true] %s3557_s13 }
  0x14   :  { %783 = vst [vmem:[#allocation5 + $0x40] sm:$0xff] %v4094_v1  ;;  %784 = vst [vmem:[#allocation5 + $0x48] sm:$0xff] %v4094_v1  ;;  %142 = vmatpush1.msra.mxu1 %v83_v7  ;;  %v70_v12 = vld [vmem:[%s4729_s0] sm:$0xff]  ;;  %v336_v14 = vld [vmem:[%s4731_s2 + $0x48] sm:$0xff] }
  0x15   :  { %785 = vst [vmem:[#allocation5 + $0x50] sm:$0xff] %v4094_v1  ;;  %786 = vst [vmem:[#allocation5 + $0x58] sm:$0xff] %v4094_v1  ;;  %v3572_v13 = vld [vmem:[%s4730_s1] ss:$0 sm:$0xff]  ;;  %143 = vmatprep.subr.mxu1 %v80_v10  ;;  %v86_v17 = vld [vmem:[%s4732_s3 + $0x38] sm:$0xff] }
  0x16   :  { %787 = vst [vmem:[#allocation5 + $0x60] sm:$0xff] %v4094_v1  ;;  %788 = vst [vmem:[#allocation5 + $0x68] sm:$0xff] %v4094_v1  ;;  %420 = vperm.xlu0 %3989, %v342_v4   ;;  %410 = vperm.xlu1 %3990, %v340_v5   ;;  %v335_v15 = vld [vmem:[%s4731_s2 + $0x40] sm:$0xff]  ;;  %v78_v16 = vmul.f32 %v3572_v13, %v70_v12  ;;  %v85_v18 = vld [vmem:[%s4732_s3 + $0x30] sm:$0xff] }
  0x17   :  { %789 = vst [vmem:[#allocation5 + $0x70] sm:$0xff] %v4094_v1  ;;  %790 = vst [vmem:[#allocation5 + $0x78] sm:$0xff] %v4094_v1  ;;  %144 = vmatpush1.msra.mxu1 %v79_v11  ;;  %v82_v19 = vld [vmem:[%s4732_s3 + $0x18] sm:$0xff]  ;;  %v81_v20 = vld [vmem:[%s4732_s3 + $0x10] sm:$0xff] }
  0x18   :  { %824 = vst [vmem:[#allocation6] sm:$0x1] %v4094_v1  ;;  %3573 = vmatmul.mubr.msk.f32.vlgmr.msra.gmra.mxu1 %vm109_vm0, %v78_v16  ;;  %212 = vmatprep.subr.mxu1 %v86_v17  ;;  %v334_v21 = vld [vmem:[%s4731_s2 + $0x38] sm:$0xff]  ;;  %v333_v22 = vld [vmem:[%s4731_s2 + $0x30] sm:$0xff]  ;;  %v332_v23 = vld [vmem:[%s4731_s2 + $0x28] sm:$0xff] }
  0x19   :  { %213 = vmatpush1.msra.mxu1 %v85_v18  ;;  %248 = vmatprep.mubr.f32.mxu1 %v4094_v1  ;;  %v331_v24 = vld [vmem:[%s4731_s2 + $0x20] sm:$0xff]  ;;  %v330_v25 = vld [vmem:[%s4731_s2 + $0x18] sm:$0xff]  ;;  %v329_v26 = vld [vmem:[%s4731_s2 + $0x10] sm:$0xff] }
  0x1a   :  { %400 = vperm.xlu1 %3990, %v338_v8   ;;  %395 = vperm.xlu0 %3989, %v337_v9   ;;  %v328_v27 = vld [vmem:[%s4731_s2 + $0x8] sm:$0xff]  ;;  %v327_v28 = vld [vmem:[%s4731_s2] sm:$0xff]  ;;  %v320_v30 = vld [vmem:[#allocation7 + $0x1c8] sm:$0xff] }
  0x1b   :  { %214 = vmatprep.subr.mxu1 %v82_v19  ;;  %v319_v29 = vld [vmem:[#allocation7 + $0x1c0] sm:$0xff]  ;;  %v322_v31 = vld [vmem:[#allocation7 + $0x1d8] sm:$0xff]  ;;  %v312_v33 = vld [vmem:[#allocation7 + $0x188] sm:$0xff] }
  0x1c   :  { %215 = vmatpush1.msra.mxu1 %v81_v20  ;;  %v311_v32 = vld [vmem:[#allocation7 + $0x180] sm:$0xff]  ;;  %v314_v34 = vld [vmem:[#allocation7 + $0x198] sm:$0xff]  ;;  %v321_v36 = vld [vmem:[#allocation7 + $0x1d0] sm:$0xff] }
  0x1d   :  { %3574 = vmatmul.mubr.msk.f32.vlgmr.msra.gmra.mxu1 %vm109_vm0, %v78_v16  ;;  %v313_v38 = vld [vmem:[#allocation7 + $0x190] sm:$0xff]  ;;  %v323_v42 = vld [vmem:[#allocation7 + $0x1e0] sm:$0xff]  ;;  %v324_v43 = vld [vmem:[#allocation7 + $0x1e8] sm:$0xff] }
  0x1e   :  { %390 = vperm.xlu1 %3990, %v336_v14   ;;  %385 = vperm.xlu0 %3989, %v335_v15   ;;  %v325_v47 = vld [vmem:[#allocation7 + $0x1f0] sm:$0xff]  ;;  %v326_v48 = vld [vmem:[#allocation7 + $0x1f8] sm:$0xff]  ;;  %v315_v49 = vld [vmem:[#allocation7 + $0x1a0] sm:$0xff] }
  0x1f   :  { %1094 = vmatprep.mubr.bf16.mxu1 %v4093_v0  ;;  %v316_v54 = vld [vmem:[#allocation7 + $0x1a8] sm:$0xff]  ;;  %v317_v55 = vld [vmem:[#allocation7 + $0x1b0] sm:$0xff]  ;;  %v318_v56 = vld [vmem:[#allocation7 + $0x1b8] sm:$0xff] }
  0x20   :  { %v307_v8 = vld [vmem:[#allocation7 + $0x160] sm:$0xff]  ;;  %v308_v13 = vld [vmem:[#allocation7 + $0x168] sm:$0xff]  ;;  %v309_v19 = vld [vmem:[#allocation7 + $0x170] sm:$0xff] }
  0x21   :  { %v310_v20 = vld [vmem:[#allocation7 + $0x178] sm:$0xff] }
  0x22   :  { %380 = vperm.xlu1 %3990, %v334_v21   ;;  %375 = vperm.xlu0 %3989, %v333_v22   ;;  %v303_v22 = vld [vmem:[#allocation7 + $0x140] sm:$0xff] }
  0x26   :  { %370 = vperm.xlu1 %3990, %v332_v23   ;;  %365 = vperm.xlu0 %3989, %v331_v24  }
  0x2a   :  { %360 = vperm.xlu1 %3990, %v330_v25   ;;  %355 = vperm.xlu0 %3989, %v329_v26  }
  0x2e   :  { %350 = vperm.xlu1 %3990, %v328_v27   ;;  %345 = vperm.xlu0 %3989, %v327_v28   ;;  %v304_v27 = vld [vmem:[#allocation7 + $0x148] sm:$0xff]  ;;  %v305_v28 = vld [vmem:[#allocation7 + $0x150] sm:$0xff] }
  0x8d   :  { %v416_v35 = vpop.permute.xlu0 %415  ;;  %v406_v37 = vpop.permute.xlu1 %405 }
  0x8e   :  { %v479_v39 = vmul.f32 %v416_v35, %v319_v29  ;;  %v480_v40 = vmul.f32 %v416_v35, %v320_v30  ;;  %v482_v41 = vmul.f32 %v416_v35, %v322_v31  ;;  %v471_v44 = vmul.f32 %v406_v37, %v311_v32  ;;  %v306_v29 = vld [vmem:[#allocation7 + $0x158] sm:$0xff] }
  0x8f   :  { %v472_v45 = vmul.f32 %v406_v37, %v312_v33  ;;  %v474_v46 = vmul.f32 %v406_v37, %v314_v34  ;;  %v481_v50 = vmul.f32 %v416_v35, %v321_v36  ;;  %v473_v53 = vmul.f32 %v406_v37, %v313_v38  ;;  %v299_v34 = vld [vmem:[#allocation7 + $0x120] sm:$0xff]  ;;  %v300_v35 = vld [vmem:[#allocation7 + $0x128] sm:$0xff] }
  0x90   :  { %v543_v51 = vmul.f32 0.5, %v479_v39  ;;  %v544_v52 = vmul.f32 0.5, %v480_v40  ;;  %v546_v57 = vmul.f32 0.5, %v482_v41  ;;  %v535_v58 = vmul.f32 0.5, %v471_v44  ;;  %v301_v40 = vld [vmem:[#allocation7 + $0x130] sm:$0xff] }
  0x91   :  { %v536_v59 = vmul.f32 0.5, %v472_v45  ;;  %v538_v60 = vmul.f32 0.5, %v474_v46  ;;  %v421_v61 = vpop.permute.xlu0 %420  ;;  %v411_v62 = vpop.permute.xlu1 %410  ;;  %v302_v46 = vld [vmem:[#allocation7 + $0x138] sm:$0xff] }
  0x92   :  { %v483_v63 = vmul.f32 %v421_v61, %v323_v42  ;;  %v484_v1 = vmul.f32 %v421_v61, %v324_v43  ;;  %v485_v2 = vmul.f32 %v421_v61, %v325_v47  ;;  %v486_v3 = vmul.f32 %v421_v61, %v326_v48 }
  0x93   :  { %v475_v4 = vmul.f32 %v411_v62, %v315_v49  ;;  %v476_v5 = vmul.f32 %v411_v62, %v316_v54  ;;  %v477_v6 = vmul.f32 %v411_v62, %v317_v55  ;;  %v478_v7 = vmul.f32 %v411_v62, %v318_v56 }
  0x94   :  { %v547_v9 = vmul.f32 0.5, %v483_v63  ;;  %v548_v10 = vmul.f32 0.5, %v484_v1  ;;  %v550_v11 = vmul.f32 0.5, %v486_v3  ;;  %v4241_v12 = vpack.c.bf16 %v485_v2, %v481_v50  ;;  %v292_v2 = vld [vmem:[#allocation7 + $0xe8] sm:$0xff]  ;;  %v293_v3 = vld [vmem:[#allocation7 + $0xf0] sm:$0xff] }
  0x95   :  { %v539_v14 = vmul.f32 0.5, %v475_v4  ;;  %v540_v15 = vmul.f32 0.5, %v476_v5  ;;  %v542_v16 = vmul.f32 0.5, %v478_v7  ;;  %v4243_v17 = vpack.c.bf16 %v477_v6, %v473_v53  ;;  %v401_v18 = vpop.permute.xlu1 %400  ;;  %v396_v21 = vpop.permute.xlu0 %395  ;;  %v296_v53 = vld [vmem:[#allocation7 + $0x108] sm:$0xff] }
  0x96   :  { %v4245_v23 = vpack.c.bf16 %v547_v9, %v543_v51  ;;  %v4247_v24 = vpack.c.bf16 %v548_v10, %v544_v52  ;;  %v4249_v25 = vpack.c.bf16 %v550_v11, %v546_v57  ;;  %v467_v26 = vmul.f32 %v401_v18, %v307_v8  ;;  %v295_v52 = vld [vmem:[#allocation7 + $0x100] sm:$0xff]  ;;  %v294_v9 = vld [vmem:[#allocation7 + $0xf8] sm:$0xff] }
  0x97   :  { %v4251_v30 = vpack.c.bf16 %v539_v14, %v535_v58  ;;  %v4253_v31 = vpack.c.bf16 %v540_v15, %v536_v59  ;;  %v4255_v32 = vpack.c.bf16 %v542_v16, %v538_v60  ;;  %v468_v33 = vmul.f32 %v401_v18, %v308_v13  ;;  %v297_v58 = vld [vmem:[#allocation7 + $0x110] sm:$0xff]  ;;  %v298_v59 = vld [vmem:[#allocation7 + $0x118] sm:$0xff]  ;;  %v291_v60 = vld [vmem:[#allocation7 + $0xe0] sm:$0xff] }
  0x98   :  { %v469_v36 = vmul.f32 %v401_v18, %v309_v19  ;;  %v470_v37 = vmul.f32 %v401_v18, %v310_v20  ;;  %v531_v38 = vmul.f32 0.5, %v467_v26  ;;  %v463_v39 = vmul.f32 %v396_v21, %v303_v22  ;;  %1021 = vmatprep.subr.bf16.mxu0 %v4247_v24  ;;  %1062 = vmatprep.subr.bf16.mxu1 %v4249_v25  ;;  %v287_v16 = vld [vmem:[#allocation7 + $0xc0] sm:$0xff]  ;;  %v288_v22 = vld [vmem:[#allocation7 + $0xc8] sm:$0xff]  ;;  %v289_v26 = vld [vmem:[#allocation7 + $0xd0] sm:$0xff] }
  0x99   :  { %v532_v41 = vmul.f32 0.5, %v468_v33  ;;  %v464_v42 = vmul.f32 %v396_v21, %v304_v27  ;;  %v465_v43 = vmul.f32 %v396_v21, %v305_v28  ;;  %v466_v44 = vmul.f32 %v396_v21, %v306_v29  ;;  %v391_v45 = vpop.permute.xlu1 %390  ;;  %v386_v47 = vpop.permute.xlu0 %385  ;;  %1022 = vmatpush1.bf16.msra.mxu0 %v4245_v23  ;;  %1063 = vmatpush1.bf16.msra.mxu1 %v4241_v12 }
  0x9a   :  { %v534_v48 = vmul.f32 0.5, %v470_v37  ;;  %v527_v49 = vmul.f32 0.5, %v463_v39  ;;  %v459_v50 = vmul.f32 %v391_v45, %v299_v34  ;;  %v460_v51 = vmul.f32 %v391_v45, %v300_v35  ;;  %1023 = vmatprep.subr.bf16.mxu0 %v4253_v31  ;;  %1064 = vmatprep.subr.bf16.mxu1 %v4255_v32  ;;  %v290_v34 = vld [vmem:[#allocation7 + $0xd8] sm:$0xff]  ;;  %v283_v35 = vld [vmem:[#allocation7 + $0xa0] sm:$0xff] }
  0x9b   :  { %v528_v54 = vmul.f32 0.5, %v464_v42  ;;  %v530_v55 = vmul.f32 0.5, %v466_v44  ;;  %v4263_v56 = vpack.c.bf16 %v469_v36, %v465_v43  ;;  %v461_v57 = vmul.f32 %v391_v45, %v301_v40  ;;  %v284_v36 = vld [vmem:[#allocation7 + $0xa8] sm:$0xff]  ;;  %v285_v42 = vld [vmem:[#allocation7 + $0xb0] sm:$0xff]  ;;  %v286_v43 = vld [vmem:[#allocation7 + $0xb8] sm:$0xff] }
  0x9c   :  { %v4265_v61 = vpack.c.bf16 %v531_v38, %v527_v49  ;;  %v462_v62 = vmul.f32 %v391_v45, %v302_v46  ;;  %v523_v63 = vmul.f32 0.5, %v459_v50  ;;  %v524_v1 = vmul.f32 0.5, %v460_v51 }
  0x9d   :  { %v4267_v4 = vpack.c.bf16 %v532_v41, %v528_v54  ;;  %v4269_v5 = vpack.c.bf16 %v534_v48, %v530_v55  ;;  %v455_v6 = vmul.f32 %v386_v47, %v295_v52  ;;  %v456_v7 = vmul.f32 %v386_v47, %v296_v53  ;;  %v381_v8 = vpop.permute.xlu1 %380  ;;  %v376_v10 = vpop.permute.xlu0 %375  ;;  %1024 = vmatpush1.bf16.msra.mxu0 %v4251_v30  ;;  %v279_v53 = vld [vmem:[#allocation7 + $0x80] sm:$0xff]  ;;  %v280_v54 = vld [vmem:[#allocation7 + $0x88] sm:$0xff] }
  0x9e   :  { %v526_v11 = vmul.f32 0.5, %v462_v62  ;;  %v457_v13 = vmul.f32 %v386_v47, %v297_v58  ;;  %v458_v14 = vmul.f32 %v386_v47, %v298_v59  ;;  %v451_v15 = vmul.f32 %v381_v8, %v291_v60  ;;  %1065 = vmatpush1.bf16.msra.mxu1 %v4243_v17  ;;  %v281_v60 = vld [vmem:[#allocation7 + $0x90] sm:$0xff]  ;;  %v282_v62 = vld [vmem:[#allocation7 + $0x98] sm:$0xff] }
  0x9f   :  { %v519_v18 = vmul.f32 0.5, %v455_v6  ;;  %v520_v19 = vmul.f32 0.5, %v456_v7  ;;  %v452_v20 = vmul.f32 %v381_v8, %v292_v2  ;;  %v453_v21 = vmul.f32 %v381_v8, %v293_v3  ;;  %1025 = vmatprep.subr.bf16.mxu0 %v4267_v4  ;;  %1066 = vmatprep.subr.bf16.mxu1 %v4269_v5 }
  0xa0   :  { %v522_v27 = vmul.f32 0.5, %v458_v14  ;;  %v4275_v28 = vpack.c.bf16 %v461_v57, %v457_v13  ;;  %v454_v29 = vmul.f32 %v381_v8, %v294_v9  ;;  %v515_v33 = vmul.f32 0.5, %v451_v15  ;;  %v276_v8 = vld [vmem:[#allocation7 + $0x68] sm:$0xff]  ;;  %v277_v9 = vld [vmem:[#allocation7 + $0x70] sm:$0xff]  ;;  %v278_v15 = vld [vmem:[#allocation7 + $0x78] sm:$0xff] }
  0xa1   :  { %v4277_v37 = vpack.c.bf16 %v523_v63, %v519_v18  ;;  %v4279_v38 = vpack.c.bf16 %v524_v1, %v520_v19  ;;  %v516_v39 = vmul.f32 0.5, %v452_v20  ;;  %v447_v40 = vmul.f32 %v376_v10, %v287_v16  ;;  %v371_v41 = vpop.permute.xlu1 %370  ;;  %v366_v44 = vpop.permute.xlu0 %365  ;;  %1026 = vmatpush1.bf16.msra.mxu0 %v4265_v61  ;;  %v275_v63 = vld [vmem:[#allocation7 + $0x60] sm:$0xff] }
  0xa2   :  { %v4282_v45 = vpack.c.bf16 %v526_v11, %v522_v27  ;;  %v518_v46 = vmul.f32 0.5, %v454_v29  ;;  %v448_v47 = vmul.f32 %v376_v10, %v288_v22  ;;  %v449_v48 = vmul.f32 %v376_v10, %v289_v26  ;;  %1067 = vmatpush1.bf16.msra.mxu1 %v4263_v56  ;;  %v271_v22 = vld [vmem:[#allocation7 + $0x40] sm:$0xff] }
  0xa3   :  { %v450_v49 = vmul.f32 %v376_v10, %v290_v34  ;;  %v511_v50 = vmul.f32 0.5, %v447_v40  ;;  %v443_v51 = vmul.f32 %v371_v41, %v283_v35  ;;  %v444_v52 = vmul.f32 %v371_v41, %v284_v36  ;;  %1027 = vmatprep.subr.bf16.mxu0 %v4279_v38  ;;  %v272_v34 = vld [vmem:[#allocation7 + $0x48] sm:$0xff]  ;;  %v273_v35 = vld [vmem:[#allocation7 + $0x50] sm:$0xff] }
  0xa4   :  { %v512_v55 = vmul.f32 0.5, %v448_v47  ;;  %v4286_v57 = vpack.c.bf16 %v453_v21, %v449_v48  ;;  %v445_v58 = vmul.f32 %v371_v41, %v285_v42  ;;  %v446_v59 = vmul.f32 %v371_v41, %v286_v43  ;;  %1068 = vmatprep.subr.bf16.mxu1 %v4282_v45  ;;  %v274_v42 = vld [vmem:[#allocation7 + $0x58] sm:$0xff] }
  0xa5   :  { %v514_v1 = vmul.f32 0.5, %v450_v49  ;;  %v4289_v2 = vpack.c.bf16 %v515_v33, %v511_v50  ;;  %v507_v3 = vmul.f32 0.5, %v443_v51  ;;  %v508_v6 = vmul.f32 0.5, %v444_v52  ;;  %v361_v7 = vpop.permute.xlu1 %360  ;;  %1028 = vmatpush1.bf16.msra.mxu0 %v4277_v37  ;;  %v356_v16 = vpop.permute.xlu0 %355  ;;  %v270_v51 = vld [vmem:[#allocation7 + $0x38] sm:$0xff] }
  0xa6   :  { %v4292_v10 = vpack.c.bf16 %v516_v39, %v512_v55  ;;  %v510_v11 = vmul.f32 0.5, %v446_v59  ;;  %v439_v13 = vmul.f32 %v366_v44, %v279_v53  ;;  %v440_v14 = vmul.f32 %v366_v44, %v280_v54  ;;  %1069 = vmatpush1.bf16.msra.mxu1 %v4275_v28 }
  0xa7   :  { %v4295_v18 = vpack.c.bf16 %v518_v46, %v514_v1  ;;  %v441_v19 = vmul.f32 %v366_v44, %v281_v60  ;;  %v442_v20 = vmul.f32 %v366_v44, %v282_v62  ;;  %v435_v21 = vmul.f32 %v361_v7, %v275_v63  ;;  %v267_v44 = vld [vmem:[#allocation7 + $0x20] sm:$0xff]  ;;  %v268_v46 = vld [vmem:[#allocation7 + $0x28] sm:$0xff] }
  0xa8   :  { %v503_v26 = vmul.f32 0.5, %v439_v13  ;;  %v504_v27 = vmul.f32 0.5, %v440_v14  ;;  %v436_v29 = vmul.f32 %v361_v7, %v276_v8  ;;  %v437_v33 = vmul.f32 %v361_v7, %v277_v9  ;;  %1029 = vmatprep.subr.bf16.mxu0 %v4292_v10  ;;  %v263_v1 = vld [vmem:[#allocation7] sm:$0xff]  ;;  %v266_v8 = vld [vmem:[#allocation7 + $0x18] sm:$0xff]  ;;  %v269_v14 = vld [vmem:[#allocation7 + $0x30] sm:$0xff] }
  0xa9   :  { %v506_v36 = vmul.f32 0.5, %v442_v20  ;;  %v4298_v39 = vpack.c.bf16 %v445_v58, %v441_v19  ;;  %v438_v40 = vmul.f32 %v361_v7, %v278_v15  ;;  %v499_v41 = vmul.f32 0.5, %v435_v21  ;;  %1070 = vmatprep.subr.bf16.mxu1 %v4295_v18  ;;  %v351_v43 = vpop.permute.xlu1 %350  ;;  %1030 = vmatpush1.bf16.msra.mxu0 %v4289_v2  ;;  %v346_v63 = vpop.permute.xlu0 %345  ;;  %v265_v15 = vld [vmem:[#allocation7 + $0x10] sm:$0xff] }
  0xaa   :  { %v4302_v47 = vpack.c.bf16 %v507_v3, %v503_v26  ;;  %v4304_v48 = vpack.c.bf16 %v508_v6, %v504_v27  ;;  %v500_v49 = vmul.f32 0.5, %v436_v29  ;;  %v431_v50 = vmul.f32 %v356_v16, %v271_v22  ;;  %1071 = vmatpush1.bf16.msra.mxu1 %v4286_v57  ;;  %v264_v3 = vld [vmem:[#allocation7 + $0x8] sm:$0xff] }
  0xab   :  { %v4307_v52 = vpack.c.bf16 %v510_v11, %v506_v36  ;;  %v502_v53 = vmul.f32 0.5, %v438_v40  ;;  %v432_v54 = vmul.f32 %v356_v16, %v272_v34  ;;  %v433_v55 = vmul.f32 %v356_v16, %v273_v35 }
  0xac   :  { %v434_v58 = vmul.f32 %v356_v16, %v274_v42  ;;  %v495_v59 = vmul.f32 0.5, %v431_v50  ;;  %v427_v60 = vmul.f32 %v351_v43, %v267_v44  ;;  %v428_v62 = vmul.f32 %v351_v43, %v268_v46  ;;  %1031 = vmatprep.subr.bf16.mxu0 %v4304_v48 }
  0xad   :  { %v496_v6 = vmul.f32 0.5, %v432_v54  ;;  %v430_v7 = vmul.f32 %v351_v43, %v270_v51  ;;  %1072 = vmatprep.subr.bf16.mxu1 %v4307_v52  ;;  %1032 = vmatpush1.bf16.msra.mxu0 %v4302_v47  ;;  %v4314_v13 = vpack.c.bf16 %v437_v33, %v433_v55  ;;  %v423_v20 = vmul.f32 %v346_v63, %v263_v1  ;;  %v87_v51 = vld [vmem:[%s4734_s5] sm:$0xf] }
  0xae   :  { %v498_v9 = vmul.f32 0.5, %v434_v58  ;;  %v4312_v11 = vpack.c.bf16 %v499_v41, %v495_v59  ;;  %1073 = vmatpush1.bf16.msra.mxu1 %v4298_v39  ;;  %v492_v19 = vmul.f32 0.5, %v428_v62  ;;  %v424_v21 = vmul.f32 %v346_v63, %v264_v3 }
  0xaf   :  { %v4317_v16 = vpack.c.bf16 %v500_v49, %v496_v6  ;;  %v491_v26 = vmul.f32 0.5, %v427_v60  ;;  %v494_v27 = vmul.f32 0.5, %v430_v7  ;;  %v426_v29 = vmul.f32 %v346_v63, %v266_v8 }
  0xb0   :  { %v4319_v22 = vpack.c.bf16 %v502_v53, %v498_v9  ;;  %v429_v34 = vmul.f32 %v351_v43, %v269_v14  ;;  %v425_v35 = vmul.f32 %v346_v63, %v265_v15  ;;  %v487_v36 = vmul.f32 0.5, %v423_v20 }
  0xb1   :  { %v488_v40 = vmul.f32 0.5, %v424_v21  ;;  %1033 = vmatprep.subr.bf16.mxu0 %v4317_v16  ;;  %v490_v33 = vmul.f32 0.5, %v426_v29  ;;  %v89_v43 = vlaneseq  ;;  %v4095_v21 = vmov 1966171168  }
  0xb2   :  { %1074 = vmatprep.subr.bf16.mxu1 %v4319_v22  ;;  %1034 = vmatpush1.bf16.msra.mxu0 %v4312_v11  ;;  %v4327_v42 = vpack.c.bf16 %v491_v26, %v487_v36  ;;  %v4331_v46 = vpack.c.bf16 %v429_v34, %v425_v35  ;;  %v1110_v26 = vunpack.c.l.s4 %v4095_v21 }
  0xb3   :  { %v4324_v41 = vpack.c.bf16 %v492_v19, %v488_v40  ;;  %1075 = vmatpush1.bf16.msra.mxu1 %v4314_v13  ;;  %v4329_v44 = vpack.c.bf16 %v494_v27, %v490_v33  ;;  %v90_v49 = vshrl.u32 %v89_v43, 7 }
  0xb4   :  { %v1111_v27 = vunpack.c.0.s8 %v1110_v26 }
  0xb5   :  { %1035 = vmatprep.subr.bf16.mxu0 %v4324_v41  ;;  %1076 = vmatprep.subr.bf16.mxu1 %v4329_v44  ;;  %v91_v50 = vsub.s32 0, %v90_v49  ;;  %v95_v53 = vsub.s32 1, %v90_v49  ;;  %v99_v58 = vsub.s32 2, %v90_v49  ;;  %v103_v62 = vsub.s32 3, %v90_v49 }
  0xb6   :  { %1036 = vmatpush1.bf16.msra.mxu0 %v4327_v42  ;;  %v4378_v34 = vsub.s32 %v1111_v27, %v90_v49 }
  0xb7   :  { %1077 = vmatpush1.bf16.msra.mxu1 %v4331_v46  ;;  %1348 = vmatprep.subr.bf16.mxu0 %v4247_v24  ;;  %v92_v54 = vrot.slane %v87_v51, %v91_v50  ;;  %v96_v55 = vrot.slane %v87_v51, %v95_v53  ;;  %v100_v6 = vrot.slane %v87_v51, %v99_v58 }
  0xb8   :  { %1389 = vmatprep.subr.bf16.mxu1 %v4249_v25  ;;  %v104_v8 = vrot.slane %v87_v51, %v103_v62 }
  0xb9   :  { %1054 = vmatmul.mubr.bf16.vlgmr.msra.gmra.mxu0 %v4093_v0 }
  0xba   :  { %1095 = vmatmul.mubr.bf16.vlgmr.msra.gmra.mxu1 %v4093_v0  ;;  %1349 = vmatpush1.bf16.msra.mxu0 %v4245_v23 }
  0xbb   :  { %1390 = vmatpush1.bf16.msra.mxu1 %v4241_v12  ;;  %1350 = vmatprep.subr.bf16.mxu0 %v4253_v31 }
  0xbc   :  { %1391 = vmatprep.subr.bf16.mxu1 %v4255_v32  ;;  %1380 = vmatprep.mubr.bf16.mxu0 %v4093_v0 }
  0xbd   :  { %1421 = vmatprep.mubr.bf16.mxu1 %v4093_v0 }
  0xbe   :  { %1351 = vmatpush1.bf16.msra.mxu0 %v4251_v30 }
  0xbf   :  { %1392 = vmatpush1.bf16.msra.mxu1 %v4243_v17  ;;  %1352 = vmatprep.subr.bf16.mxu0 %v4267_v4 }
  0xc0   :  { %1393 = vmatprep.subr.bf16.mxu1 %v4269_v5 }
  0xc2   :  { %1353 = vmatpush1.bf16.msra.mxu0 %v4265_v61 }
  0xc3   :  { %1394 = vmatpush1.bf16.msra.mxu1 %v4263_v56  ;;  %1354 = vmatprep.subr.bf16.mxu0 %v4279_v38 }
  0xc4   :  { %1395 = vmatprep.subr.bf16.mxu1 %v4282_v45 }
  0xc6   :  { %1355 = vmatpush1.bf16.msra.mxu0 %v4277_v37 }
  0xc7   :  { %1396 = vmatpush1.bf16.msra.mxu1 %v4275_v28  ;;  %1356 = vmatprep.subr.bf16.mxu0 %v4292_v10 }
  0xc8   :  { %1397 = vmatprep.subr.bf16.mxu1 %v4295_v18 }
  0xca   :  { %1357 = vmatpush1.bf16.msra.mxu0 %v4289_v2 }
  0xcb   :  { %1398 = vmatpush1.bf16.msra.mxu1 %v4286_v57  ;;  %1358 = vmatprep.subr.bf16.mxu0 %v4304_v48 }
  0xcc   :  { %1399 = vmatprep.subr.bf16.mxu1 %v4307_v52 }
  0xce   :  { %1359 = vmatpush1.bf16.msra.mxu0 %v4302_v47 }
  0xcf   :  { %1400 = vmatpush1.bf16.msra.mxu1 %v4298_v39  ;;  %1360 = vmatprep.subr.bf16.mxu0 %v4317_v16 }
  0xd0   :  { %1401 = vmatprep.subr.bf16.mxu1 %v4319_v22 }
  0xd2   :  { %1361 = vmatpush1.bf16.msra.mxu0 %v4312_v11 }
  0xd3   :  { %1402 = vmatpush1.bf16.msra.mxu1 %v4314_v13  ;;  %1362 = vmatprep.subr.bf16.mxu0 %v4324_v41 }
  0xd4   :  { %1403 = vmatprep.subr.bf16.mxu1 %v4329_v44 }
  0xd6   :  { %1363 = vmatpush1.bf16.msra.mxu0 %v4327_v42 }
  0xd7   :  { %1404 = vmatpush1.bf16.msra.mxu1 %v4331_v46  ;;  %1675 = vmatprep.subr.bf16.mxu0 %v4247_v24 }
  0xd8   :  { %1716 = vmatprep.subr.bf16.mxu1 %v4249_v25  ;;  %v179_v59 = vpop.f32.mrf.mxu1 }
  0xd9   :  { %v180_v60 = vadd.f32 %v179_v59, %v92_v54 }
  0xda   :  { %v181_v63 = vpop.f32.mrf.mxu1 }
  0xdb   :  { %v255_v1 = vmul.f32 0.5, %v180_v60  ;;  %v182_v3 = vadd.f32 %v181_v63, %v96_v55 }
  0xdd   :  { %259 = vst [vmem:[#allocation2] sm:$0xff] %v255_v1  ;;  %v256_v7 = vmul.f32 0.5, %v182_v3  ;;  %v250_v9 = vpop.f32.mrf.mxu1 }
  0xde   :  { %v251_v14 = vadd.f32 %v250_v9, %v100_v6 }
  0xdf   :  { %260 = vst [vmem:[#allocation2 + $0x8] sm:$0xff] %v256_v7  ;;  %v252_v15 = vpop.f32.mrf.mxu1 }
  0xe0   :  { %261 = vst [vmem:[#allocation2 + $0x10] sm:$0xff] %v251_v14  ;;  %v253_v19 = vadd.f32 %v252_v15, %v104_v8 }
  0xe2   :  { %v258_v20 = vmul.f32 0.5, %v253_v19 }
  0xe4   :  { %262 = vst [vmem:[#allocation2 + $0x18] sm:$0xff] %v258_v20 }
  0xeb   :  { %v828_v62 = vld [vmem:[#allocation2] ss:$8 sm:$0xf] }
 0x179   :  { %v1055_v29 = vpop.f32.mrf.mxu0 }
 0x17a   :  { %v1096_v35 = vpop.f32.mrf.mxu1 }
 0x17b   :  { %v1057_v36 = vpop.f32.mrf.mxu0 }
 0x17c   :  { %v1107_v40 = vcombine.low %v1055_v29, %v1057_v36  ;;  %v1098_v33 = vpop.f32.mrf.mxu1 }
 0x17d   :  { %v1108_v43 = vcombine.low %v1096_v35, %v1098_v33  ;;  %v1059_v50 = vpop.f32.mrf.mxu0 }
 0x17e   :  { %v1115_v51 = vrot.slane %v1107_v40, %v4378_v34  ;;  %v1100_v53 = vpop.f32.mrf.mxu1 }
 0x17f   :  { %v1122_v54 = vrot.slane %v1108_v43, %v4378_v34  ;;  %v1060_v55 = vpop.f32.mrf.mxu0 }
 0x180   :  { %v1101_v58 = vpop.f32.mrf.mxu1 }
 0x181   :  { %v1123_v59 = vcombine.low %v1115_v51, %v1122_v54 }
 0x183   :  { %v1130_v60 = vrot.slane %v1123_v59, %v4378_v34 }
 0x185   :  { %v1132_v63 = vadd.f32 %v1130_v60, %v828_v62 }
 0x187   :  { %3991 = vtanh.f32 %v1132_v63 }
 0x194   :  { %v3992_v49 = vpop.eup %3991 }
 0x195   :  { %v1134_v1 = vmul.f32 0.5, %v3992_v49  ;;  %v1137_v3 = vrot.slane %v3992_v49, 1  ;;  %v1146_v9 = vrot.slane %v3992_v49, 2  ;;  %v1141_v20 = vrot.slane %v3992_v49, 3 }
 0x196   :  { %v1154_v49 = vld [vmem:[#allocation2 + $0x1] ss:$8 sm:$0xf] }
 0x197   :  { %v1135_v6 = vadd.f32 0.5, %v1134_v1  ;;  %v1139_v7 = vmul.f32 0.5, %v1137_v3  ;;  %v1143_v21 = vmul.f32 0.5, %v1141_v20 }
 0x199   :  { %v1140_v8 = vadd.f32 0.5, %v1139_v7  ;;  %v1148_v15 = vmul.f32 %v1146_v9, %v1135_v6  ;;  %v1144_v26 = vadd.f32 0.5, %v1143_v21 }
 0x19b   :  { %v1145_v14 = vmul.f32 0.0, %v1140_v8 }
 0x19d   :  { %v4383_v19 = vadd.f32 %v1148_v15, %v1145_v14 }
 0x19f   :  { %3993 = vtanh.f32 %v4383_v19 }
 0x1ac   :  { %v3994_v27 = vpop.eup %3993 }
 0x1ad   :  { %v1151_v29 = vmul.f32 %v3994_v27, %v1144_v26 }
 0x1af   :  { %1152 = vst [vmem:[#allocation3] sm:$0x1] %v1151_v29  ;;  %v1155_v35 = vpack.c.bf16 %v1151_v29, %v1151_v29 }
 0x1b1   :  { %1381 = vmatmul.mubr.bf16.vlgmr.msra.gmra.mxu0 %v1155_v35  ;;  %1422 = vmatmul.mubr.bf16.vlgmr.msra.gmra.mxu1 %v1155_v35 }
 0x1b2   :  { %1676 = vmatpush1.bf16.msra.mxu0 %v4245_v23  ;;  %1717 = vmatpush1.bf16.msra.mxu1 %v4241_v12 }
 0x1b3   :  { %1677 = vmatprep.subr.bf16.mxu0 %v4253_v31  ;;  %1718 = vmatprep.subr.bf16.mxu1 %v4255_v32 }
 0x1b4   :  { %1707 = vmatprep.mubr.bf16.mxu0 %v4093_v0  ;;  %1748 = vmatprep.mubr.bf16.mxu1 %v4093_v0 }
 0x1b6   :  { %1678 = vmatpush1.bf16.msra.mxu0 %v4251_v30  ;;  %1719 = vmatpush1.bf16.msra.mxu1 %v4243_v17 }
 0x1b7   :  { %1679 = vmatprep.subr.bf16.mxu0 %v4267_v4  ;;  %1720 = vmatprep.subr.bf16.mxu1 %v4269_v5 }
 0x1ba   :  { %1680 = vmatpush1.bf16.msra.mxu0 %v4265_v61  ;;  %1721 = vmatpush1.bf16.msra.mxu1 %v4263_v56 }
 0x1bb   :  { %1681 = vmatprep.subr.bf16.mxu0 %v4279_v38  ;;  %1722 = vmatprep.subr.bf16.mxu1 %v4282_v45 }
 0x1be   :  { %1682 = vmatpush1.bf16.msra.mxu0 %v4277_v37  ;;  %1723 = vmatpush1.bf16.msra.mxu1 %v4275_v28 }
 0x1bf   :  { %1683 = vmatprep.subr.bf16.mxu0 %v4292_v10  ;;  %1724 = vmatprep.subr.bf16.mxu1 %v4295_v18 }
 0x1c2   :  { %1684 = vmatpush1.bf16.msra.mxu0 %v4289_v2  ;;  %1725 = vmatpush1.bf16.msra.mxu1 %v4286_v57 }
 0x1c3   :  { %1685 = vmatprep.subr.bf16.mxu0 %v4304_v48  ;;  %1726 = vmatprep.subr.bf16.mxu1 %v4307_v52 }
 0x1c6   :  { %1686 = vmatpush1.bf16.msra.mxu0 %v4302_v47  ;;  %1727 = vmatpush1.bf16.msra.mxu1 %v4298_v39 }
 0x1c7   :  { %1687 = vmatprep.subr.bf16.mxu0 %v4317_v16  ;;  %1728 = vmatprep.subr.bf16.mxu1 %v4319_v22 }
 0x1ca   :  { %1688 = vmatpush1.bf16.msra.mxu0 %v4312_v11  ;;  %1729 = vmatpush1.bf16.msra.mxu1 %v4314_v13 }
 0x1cb   :  { %1689 = vmatprep.subr.bf16.mxu0 %v4324_v41  ;;  %1730 = vmatprep.subr.bf16.mxu1 %v4329_v44 }
 0x1ce   :  { %1690 = vmatpush1.bf16.msra.mxu0 %v4327_v42  ;;  %1731 = vmatpush1.bf16.msra.mxu1 %v4331_v46 }
 0x1cf   :  { %2002 = vmatprep.subr.bf16.mxu0 %v4247_v24  ;;  %2043 = vmatprep.subr.bf16.mxu1 %v4249_v25 }
 0x271   :  { %v1382_v36 = vpop.f32.mrf.mxu0  ;;  %v1423_v40 = vpop.f32.mrf.mxu1 }
 0x273   :  { %v1384_v33 = vpop.f32.mrf.mxu0  ;;  %v1425_v43 = vpop.f32.mrf.mxu1 }
 0x274   :  { %v1434_v50 = vcombine.low %v1382_v36, %v1384_v33  ;;  %v1435_v51 = vcombine.low %v1423_v40, %v1425_v43 }
 0x275   :  { %v1386_v53 = vpop.f32.mrf.mxu0  ;;  %v1427_v54 = vpop.f32.mrf.mxu1 }
 0x276   :  { %v1442_v55 = vrot.slane %v1434_v50, %v4378_v34  ;;  %v1449_v58 = vrot.slane %v1435_v51, %v4378_v34 }
 0x277   :  { %v1387_v59 = vpop.f32.mrf.mxu0  ;;  %v1428_v60 = vpop.f32.mrf.mxu1 }
 0x278   :  { %v1450_v62 = vcombine.low %v1442_v55, %v1449_v58 }
 0x27a   :  { %v1457_v63 = vrot.slane %v1450_v62, %v4378_v34 }
 0x27c   :  { %v1459_v1 = vadd.f32 %v1457_v63, %v1154_v49 }
 0x27e   :  { %3995 = vtanh.f32 %v1459_v1 }
 0x28b   :  { %v3996_v3 = vpop.eup %3995 }
 0x28c   :  { %v1461_v6 = vmul.f32 0.5, %v3996_v3  ;;  %v1464_v7 = vrot.slane %v3996_v3, 1  ;;  %v1473_v15 = vrot.slane %v3996_v3, 2  ;;  %v1468_v27 = vrot.slane %v3996_v3, 3 }
 0x28d   :  { %v1481_v3 = vld [vmem:[#allocation2 + $0x2] ss:$8 sm:$0xf] }
 0x28e   :  { %v1462_v8 = vadd.f32 0.5, %v1461_v6  ;;  %v1466_v9 = vmul.f32 0.5, %v1464_v7  ;;  %v1470_v29 = vmul.f32 0.5, %v1468_v27 }
 0x290   :  { %v1467_v14 = vadd.f32 0.5, %v1466_v9  ;;  %v1475_v21 = vmul.f32 %v1473_v15, %v1462_v8  ;;  %v1471_v35 = vadd.f32 0.5, %v1470_v29 }
 0x292   :  { %v1472_v20 = vmul.f32 %v1467_v14, %v4383_v19 }
 0x294   :  { %v4424_v26 = vadd.f32 %v1475_v21, %v1472_v20 }
 0x296   :  { %3997 = vtanh.f32 %v4424_v26 }
 0x2a3   :  { %v3998_v36 = vpop.eup %3997 }
 0x2a4   :  { %v1478_v40 = vmul.f32 %v3998_v36, %v1471_v35 }
 0x2a6   :  { %1479 = vst [vmem:[#allocation3 + $0x1] sm:$0x1] %v1478_v40  ;;  %v1482_v33 = vpack.c.bf16 %v1478_v40, %v1478_v40 }
 0x2a8   :  { %1708 = vmatmul.mubr.bf16.vlgmr.msra.gmra.mxu0 %v1482_v33  ;;  %1749 = vmatmul.mubr.bf16.vlgmr.msra.gmra.mxu1 %v1482_v33 }
 0x2a9   :  { %2003 = vmatpush1.bf16.msra.mxu0 %v4245_v23  ;;  %2044 = vmatpush1.bf16.msra.mxu1 %v4241_v12 }
 0x2aa   :  { %2004 = vmatprep.subr.bf16.mxu0 %v4253_v31  ;;  %2045 = vmatprep.subr.bf16.mxu1 %v4255_v32 }
 0x2ab   :  { %2034 = vmatprep.mubr.bf16.mxu0 %v4093_v0  ;;  %2075 = vmatprep.mubr.bf16.mxu1 %v4093_v0 }
 0x2ad   :  { %2005 = vmatpush1.bf16.msra.mxu0 %v4251_v30  ;;  %2046 = vmatpush1.bf16.msra.mxu1 %v4243_v17 }
 0x2ae   :  { %2006 = vmatprep.subr.bf16.mxu0 %v4267_v4  ;;  %2047 = vmatprep.subr.bf16.mxu1 %v4269_v5 }
 0x2b1   :  { %2007 = vmatpush1.bf16.msra.mxu0 %v4265_v61  ;;  %2048 = vmatpush1.bf16.msra.mxu1 %v4263_v56 }
 0x2b2   :  { %2008 = vmatprep.subr.bf16.mxu0 %v4279_v38  ;;  %2049 = vmatprep.subr.bf16.mxu1 %v4282_v45 }
 0x2b5   :  { %2009 = vmatpush1.bf16.msra.mxu0 %v4277_v37  ;;  %2050 = vmatpush1.bf16.msra.mxu1 %v4275_v28 }
 0x2b6   :  { %2010 = vmatprep.subr.bf16.mxu0 %v4292_v10  ;;  %2051 = vmatprep.subr.bf16.mxu1 %v4295_v18 }
 0x2b9   :  { %2011 = vmatpush1.bf16.msra.mxu0 %v4289_v2  ;;  %2052 = vmatpush1.bf16.msra.mxu1 %v4286_v57 }
 0x2ba   :  { %2012 = vmatprep.subr.bf16.mxu0 %v4304_v48  ;;  %2053 = vmatprep.subr.bf16.mxu1 %v4307_v52 }
 0x2bd   :  { %2013 = vmatpush1.bf16.msra.mxu0 %v4302_v47  ;;  %2054 = vmatpush1.bf16.msra.mxu1 %v4298_v39 }
 0x2be   :  { %2014 = vmatprep.subr.bf16.mxu0 %v4317_v16  ;;  %2055 = vmatprep.subr.bf16.mxu1 %v4319_v22 }
 0x2c1   :  { %2015 = vmatpush1.bf16.msra.mxu0 %v4312_v11  ;;  %2056 = vmatpush1.bf16.msra.mxu1 %v4314_v13 }
 0x2c2   :  { %2016 = vmatprep.subr.bf16.mxu0 %v4324_v41  ;;  %2057 = vmatprep.subr.bf16.mxu1 %v4329_v44 }
 0x2c5   :  { %2017 = vmatpush1.bf16.msra.mxu0 %v4327_v42  ;;  %2058 = vmatpush1.bf16.msra.mxu1 %v4331_v46 }
 0x2c6   :  { %2329 = vmatprep.subr.bf16.mxu0 %v4247_v24  ;;  %2370 = vmatprep.subr.bf16.mxu1 %v4249_v25 }
 0x368   :  { %v1709_v19 = vpop.f32.mrf.mxu0  ;;  %v1750_v43 = vpop.f32.mrf.mxu1 }
 0x36a   :  { %v1711_v50 = vpop.f32.mrf.mxu0  ;;  %v1752_v51 = vpop.f32.mrf.mxu1 }
 0x36b   :  { %v1761_v53 = vcombine.low %v1709_v19, %v1711_v50  ;;  %v1762_v54 = vcombine.low %v1750_v43, %v1752_v51 }
 0x36c   :  { %v1713_v55 = vpop.f32.mrf.mxu0  ;;  %v1754_v58 = vpop.f32.mrf.mxu1 }
 0x36d   :  { %v1769_v59 = vrot.slane %v1761_v53, %v4378_v34  ;;  %v1776_v60 = vrot.slane %v1762_v54, %v4378_v34 }
 0x36e   :  { %v1714_v62 = vpop.f32.mrf.mxu0  ;;  %v1755_v63 = vpop.f32.mrf.mxu1 }
 0x36f   :  { %v1777_v49 = vcombine.low %v1769_v59, %v1776_v60 }
 0x371   :  { %v1784_v1 = vrot.slane %v1777_v49, %v4378_v34 }
 0x373   :  { %v1786_v6 = vadd.f32 %v1784_v1, %v1481_v3 }
 0x375   :  { %3999 = vtanh.f32 %v1786_v6 }
 0x382   :  { %v4000_v7 = vpop.eup %3999 }
 0x383   :  { %v1788_v8 = vmul.f32 0.5, %v4000_v7  ;;  %v1791_v9 = vrot.slane %v4000_v7, 1  ;;  %v1800_v21 = vrot.slane %v4000_v7, 2  ;;  %v1795_v36 = vrot.slane %v4000_v7, 3 }
 0x384   :  { %v1808_v7 = vld [vmem:[#allocation2 + $0x3] ss:$8 sm:$0xf] }
 0x385   :  { %v1789_v14 = vadd.f32 0.5, %v1788_v8  ;;  %v1793_v15 = vmul.f32 0.5, %v1791_v9  ;;  %v1797_v40 = vmul.f32 0.5, %v1795_v36 }
 0x387   :  { %v1794_v20 = vadd.f32 0.5, %v1793_v15  ;;  %v1802_v29 = vmul.f32 %v1800_v21, %v1789_v14  ;;  %v1798_v33 = vadd.f32 0.5, %v1797_v40 }
 0x389   :  { %v1799_v27 = vmul.f32 %v1794_v20, %v4424_v26 }
 0x38b   :  { %v4465_v35 = vadd.f32 %v1802_v29, %v1799_v27 }
 0x38d   :  { %4001 = vtanh.f32 %v4465_v35 }
 0x39a   :  { %v4002_v19 = vpop.eup %4001 }
 0x39b   :  { %v1805_v43 = vmul.f32 %v4002_v19, %v1798_v33 }
 0x39d   :  { %1806 = vst [vmem:[#allocation3 + $0x2] sm:$0x1] %v1805_v43  ;;  %v1809_v50 = vpack.c.bf16 %v1805_v43, %v1805_v43 }
 0x39f   :  { %2035 = vmatmul.mubr.bf16.vlgmr.msra.gmra.mxu0 %v1809_v50  ;;  %2076 = vmatmul.mubr.bf16.vlgmr.msra.gmra.mxu1 %v1809_v50 }
 0x3a0   :  { %2330 = vmatpush1.bf16.msra.mxu0 %v4245_v23  ;;  %2371 = vmatpush1.bf16.msra.mxu1 %v4241_v12 }
 0x3a1   :  { %2331 = vmatprep.subr.bf16.mxu0 %v4253_v31  ;;  %2372 = vmatprep.subr.bf16.mxu1 %v4255_v32 }
 0x3a2   :  { %2361 = vmatprep.mubr.bf16.mxu0 %v4093_v0  ;;  %2402 = vmatprep.mubr.bf16.mxu1 %v4093_v0 }
 0x3a4   :  { %2332 = vmatpush1.bf16.msra.mxu0 %v4251_v30  ;;  %2373 = vmatpush1.bf16.msra.mxu1 %v4243_v17 }
 0x3a5   :  { %2333 = vmatprep.subr.bf16.mxu0 %v4267_v4  ;;  %2374 = vmatprep.subr.bf16.mxu1 %v4269_v5 }
 0x3a8   :  { %2334 = vmatpush1.bf16.msra.mxu0 %v4265_v61  ;;  %2375 = vmatpush1.bf16.msra.mxu1 %v4263_v56 }
 0x3a9   :  { %2335 = vmatprep.subr.bf16.mxu0 %v4279_v38  ;;  %2376 = vmatprep.subr.bf16.mxu1 %v4282_v45 }
 0x3ac   :  { %2336 = vmatpush1.bf16.msra.mxu0 %v4277_v37  ;;  %2377 = vmatpush1.bf16.msra.mxu1 %v4275_v28 }
 0x3ad   :  { %2337 = vmatprep.subr.bf16.mxu0 %v4292_v10  ;;  %2378 = vmatprep.subr.bf16.mxu1 %v4295_v18 }
 0x3b0   :  { %2338 = vmatpush1.bf16.msra.mxu0 %v4289_v2  ;;  %2379 = vmatpush1.bf16.msra.mxu1 %v4286_v57 }
 0x3b1   :  { %2339 = vmatprep.subr.bf16.mxu0 %v4304_v48  ;;  %2380 = vmatprep.subr.bf16.mxu1 %v4307_v52 }
 0x3b4   :  { %2340 = vmatpush1.bf16.msra.mxu0 %v4302_v47  ;;  %2381 = vmatpush1.bf16.msra.mxu1 %v4298_v39 }
 0x3b5   :  { %2341 = vmatprep.subr.bf16.mxu0 %v4317_v16  ;;  %2382 = vmatprep.subr.bf16.mxu1 %v4319_v22 }
 0x3b8   :  { %2342 = vmatpush1.bf16.msra.mxu0 %v4312_v11  ;;  %2383 = vmatpush1.bf16.msra.mxu1 %v4314_v13 }
 0x3b9   :  { %2343 = vmatprep.subr.bf16.mxu0 %v4324_v41  ;;  %2384 = vmatprep.subr.bf16.mxu1 %v4329_v44 }
 0x3bc   :  { %2344 = vmatpush1.bf16.msra.mxu0 %v4327_v42  ;;  %2385 = vmatpush1.bf16.msra.mxu1 %v4331_v46 }
 0x3bd   :  { %2656 = vmatprep.subr.bf16.mxu0 %v4247_v24  ;;  %2697 = vmatprep.subr.bf16.mxu1 %v4249_v25 }
 0x45f   :  { %v2036_v26 = vpop.f32.mrf.mxu0  ;;  %v2077_v51 = vpop.f32.mrf.mxu1 }
 0x461   :  { %v2038_v53 = vpop.f32.mrf.mxu0  ;;  %v2079_v54 = vpop.f32.mrf.mxu1 }
 0x462   :  { %v2088_v55 = vcombine.low %v2036_v26, %v2038_v53  ;;  %v2089_v58 = vcombine.low %v2077_v51, %v2079_v54 }
 0x463   :  { %v2040_v59 = vpop.f32.mrf.mxu0  ;;  %v2081_v60 = vpop.f32.mrf.mxu1 }
 0x464   :  { %v2096_v62 = vrot.slane %v2088_v55, %v4378_v34  ;;  %v2103_v63 = vrot.slane %v2089_v58, %v4378_v34 }
 0x465   :  { %v2041_v49 = vpop.f32.mrf.mxu0  ;;  %v2082_v1 = vpop.f32.mrf.mxu1 }
 0x466   :  { %v2104_v3 = vcombine.low %v2096_v62, %v2103_v63 }
 0x468   :  { %v2111_v6 = vrot.slane %v2104_v3, %v4378_v34 }
 0x46a   :  { %v2113_v8 = vadd.f32 %v2111_v6, %v1808_v7 }
 0x46c   :  { %4003 = vtanh.f32 %v2113_v8 }
 0x479   :  { %v4004_v9 = vpop.eup %4003 }
 0x47a   :  { %v2115_v14 = vmul.f32 0.5, %v4004_v9  ;;  %v2118_v15 = vrot.slane %v4004_v9, 1  ;;  %v2127_v29 = vrot.slane %v4004_v9, 2  ;;  %v2122_v19 = vrot.slane %v4004_v9, 3 }
 0x47b   :  { %v2135_v9 = vld [vmem:[#allocation2 + $0x4] ss:$8 sm:$0xf] }
 0x47c   :  { %v2116_v20 = vadd.f32 0.5, %v2115_v14  ;;  %v2120_v21 = vmul.f32 0.5, %v2118_v15  ;;  %v2124_v43 = vmul.f32 0.5, %v2122_v19 }
 0x47e   :  { %v2121_v27 = vadd.f32 0.5, %v2120_v21  ;;  %v2129_v40 = vmul.f32 %v2127_v29, %v2116_v20  ;;  %v2125_v50 = vadd.f32 0.5, %v2124_v43 }
 0x480   :  { %v2126_v36 = vmul.f32 %v2121_v27, %v4465_v35 }
 0x482   :  { %v4506_v33 = vadd.f32 %v2129_v40, %v2126_v36 }
 0x484   :  { %4005 = vtanh.f32 %v4506_v33 }
 0x491   :  { %v4006_v26 = vpop.eup %4005 }
 0x492   :  { %v2132_v51 = vmul.f32 %v4006_v26, %v2125_v50 }
 0x494   :  { %2133 = vst [vmem:[#allocation3 + $0x3] sm:$0x1] %v2132_v51  ;;  %v2136_v53 = vpack.c.bf16 %v2132_v51, %v2132_v51 }
 0x496   :  { %2362 = vmatmul.mubr.bf16.vlgmr.msra.gmra.mxu0 %v2136_v53  ;;  %2403 = vmatmul.mubr.bf16.vlgmr.msra.gmra.mxu1 %v2136_v53 }
 0x497   :  { %2657 = vmatpush1.bf16.msra.mxu0 %v4245_v23  ;;  %2698 = vmatpush1.bf16.msra.mxu1 %v4241_v12 }
 0x498   :  { %2658 = vmatprep.subr.bf16.mxu0 %v4253_v31  ;;  %2699 = vmatprep.subr.bf16.mxu1 %v4255_v32 }
 0x499   :  { %2688 = vmatprep.mubr.bf16.mxu0 %v4093_v0  ;;  %2729 = vmatprep.mubr.bf16.mxu1 %v4093_v0 }
 0x49b   :  { %2659 = vmatpush1.bf16.msra.mxu0 %v4251_v30  ;;  %2700 = vmatpush1.bf16.msra.mxu1 %v4243_v17 }
 0x49c   :  { %2660 = vmatprep.subr.bf16.mxu0 %v4267_v4  ;;  %2701 = vmatprep.subr.bf16.mxu1 %v4269_v5 }
 0x49f   :  { %2661 = vmatpush1.bf16.msra.mxu0 %v4265_v61  ;;  %2702 = vmatpush1.bf16.msra.mxu1 %v4263_v56 }
 0x4a0   :  { %2662 = vmatprep.subr.bf16.mxu0 %v4279_v38  ;;  %2703 = vmatprep.subr.bf16.mxu1 %v4282_v45 }
 0x4a3   :  { %2663 = vmatpush1.bf16.msra.mxu0 %v4277_v37  ;;  %2704 = vmatpush1.bf16.msra.mxu1 %v4275_v28 }
 0x4a4   :  { %2664 = vmatprep.subr.bf16.mxu0 %v4292_v10  ;;  %2705 = vmatprep.subr.bf16.mxu1 %v4295_v18 }
 0x4a7   :  { %2665 = vmatpush1.bf16.msra.mxu0 %v4289_v2  ;;  %2706 = vmatpush1.bf16.msra.mxu1 %v4286_v57 }
 0x4a8   :  { %2666 = vmatprep.subr.bf16.mxu0 %v4304_v48  ;;  %2707 = vmatprep.subr.bf16.mxu1 %v4307_v52 }
 0x4ab   :  { %2667 = vmatpush1.bf16.msra.mxu0 %v4302_v47  ;;  %2708 = vmatpush1.bf16.msra.mxu1 %v4298_v39 }
 0x4ac   :  { %2668 = vmatprep.subr.bf16.mxu0 %v4317_v16  ;;  %2709 = vmatprep.subr.bf16.mxu1 %v4319_v22 }
 0x4af   :  { %2669 = vmatpush1.bf16.msra.mxu0 %v4312_v11  ;;  %2710 = vmatpush1.bf16.msra.mxu1 %v4314_v13 }
 0x4b0   :  { %2670 = vmatprep.subr.bf16.mxu0 %v4324_v41  ;;  %2711 = vmatprep.subr.bf16.mxu1 %v4329_v44 }
 0x4b3   :  { %2671 = vmatpush1.bf16.msra.mxu0 %v4327_v42  ;;  %2712 = vmatpush1.bf16.msra.mxu1 %v4331_v46 }
 0x4b4   :  { %2983 = vmatprep.subr.bf16.mxu0 %v4247_v24  ;;  %3024 = vmatprep.subr.bf16.mxu1 %v4249_v25 }
 0x556   :  { %v2363_v35 = vpop.f32.mrf.mxu0  ;;  %v2404_v54 = vpop.f32.mrf.mxu1 }
 0x558   :  { %v2365_v55 = vpop.f32.mrf.mxu0  ;;  %v2406_v58 = vpop.f32.mrf.mxu1 }
 0x559   :  { %v2415_v59 = vcombine.low %v2363_v35, %v2365_v55  ;;  %v2416_v60 = vcombine.low %v2404_v54, %v2406_v58 }
 0x55a   :  { %v2367_v62 = vpop.f32.mrf.mxu0  ;;  %v2408_v63 = vpop.f32.mrf.mxu1 }
 0x55b   :  { %v2423_v49 = vrot.slane %v2415_v59, %v4378_v34  ;;  %v2430_v1 = vrot.slane %v2416_v60, %v4378_v34 }
 0x55c   :  { %v2368_v3 = vpop.f32.mrf.mxu0  ;;  %v2409_v6 = vpop.f32.mrf.mxu1 }
 0x55d   :  { %v2431_v7 = vcombine.low %v2423_v49, %v2430_v1 }
 0x55f   :  { %v2438_v8 = vrot.slane %v2431_v7, %v4378_v34 }
 0x561   :  { %v2440_v14 = vadd.f32 %v2438_v8, %v2135_v9 }
 0x563   :  { %4007 = vtanh.f32 %v2440_v14 }
 0x570   :  { %v4008_v15 = vpop.eup %4007 }
 0x571   :  { %v2442_v20 = vmul.f32 0.5, %v4008_v15  ;;  %v2445_v21 = vrot.slane %v4008_v15, 1  ;;  %v2454_v40 = vrot.slane %v4008_v15, 2  ;;  %v2449_v26 = vrot.slane %v4008_v15, 3 }
 0x573   :  { %v2443_v27 = vadd.f32 0.5, %v2442_v20  ;;  %v2447_v29 = vmul.f32 0.5, %v2445_v21  ;;  %v2451_v51 = vmul.f32 0.5, %v2449_v26 }
 0x575   :  { %v2448_v36 = vadd.f32 0.5, %v2447_v29  ;;  %v2456_v43 = vmul.f32 %v2454_v40, %v2443_v27  ;;  %v2452_v53 = vadd.f32 0.5, %v2451_v51 }
 0x577   :  { %v2453_v19 = vmul.f32 %v2448_v36, %v4506_v33 }
 0x579   :  { %v4547_v50 = vadd.f32 %v2456_v43, %v2453_v19 }
 0x57b   :  { %4009 = vtanh.f32 %v4547_v50 }
 0x588   :  { %v4010_v35 = vpop.eup %4009 }
 0x589   :  { %v2459_v54 = vmul.f32 %v4010_v35, %v2452_v53 }
 0x58b   :  { %2460 = vst [vmem:[#allocation3 + $0x4] sm:$0x1] %v2459_v54  ;;  %v2463_v55 = vpack.c.bf16 %v2459_v54, %v2459_v54 }
 0x58d   :  { %2689 = vmatmul.mubr.bf16.vlgmr.msra.gmra.mxu0 %v2463_v55  ;;  %2730 = vmatmul.mubr.bf16.vlgmr.msra.gmra.mxu1 %v2463_v55 }
 0x58e   :  { %2984 = vmatpush1.bf16.msra.mxu0 %v4245_v23  ;;  %3025 = vmatpush1.bf16.msra.mxu1 %v4241_v12 }
 0x58f   :  { %2985 = vmatprep.subr.bf16.mxu0 %v4253_v31  ;;  %3026 = vmatprep.subr.bf16.mxu1 %v4255_v32 }
 0x590   :  { %3015 = vmatprep.mubr.bf16.mxu0 %v4093_v0  ;;  %3056 = vmatprep.mubr.bf16.mxu1 %v4093_v0 }
 0x592   :  { %2986 = vmatpush1.bf16.msra.mxu0 %v4251_v30  ;;  %3027 = vmatpush1.bf16.msra.mxu1 %v4243_v17 }
 0x593   :  { %2987 = vmatprep.subr.bf16.mxu0 %v4267_v4  ;;  %3028 = vmatprep.subr.bf16.mxu1 %v4269_v5 }
 0x596   :  { %2988 = vmatpush1.bf16.msra.mxu0 %v4265_v61  ;;  %3029 = vmatpush1.bf16.msra.mxu1 %v4263_v56 }
 0x597   :  { %2989 = vmatprep.subr.bf16.mxu0 %v4279_v38  ;;  %3030 = vmatprep.subr.bf16.mxu1 %v4282_v45 }
 0x59a   :  { %2990 = vmatpush1.bf16.msra.mxu0 %v4277_v37  ;;  %3031 = vmatpush1.bf16.msra.mxu1 %v4275_v28 }
 0x59b   :  { %2991 = vmatprep.subr.bf16.mxu0 %v4292_v10  ;;  %3032 = vmatprep.subr.bf16.mxu1 %v4295_v18 }
 0x59e   :  { %2992 = vmatpush1.bf16.msra.mxu0 %v4289_v2  ;;  %3033 = vmatpush1.bf16.msra.mxu1 %v4286_v57 }
 0x59f   :  { %2993 = vmatprep.subr.bf16.mxu0 %v4304_v48  ;;  %3034 = vmatprep.subr.bf16.mxu1 %v4307_v52 }
 0x5a2   :  { %2994 = vmatpush1.bf16.msra.mxu0 %v4302_v47  ;;  %3035 = vmatpush1.bf16.msra.mxu1 %v4298_v39 }
 0x5a3   :  { %2995 = vmatprep.subr.bf16.mxu0 %v4317_v16  ;;  %3036 = vmatprep.subr.bf16.mxu1 %v4319_v22 }
 0x5a6   :  { %2996 = vmatpush1.bf16.msra.mxu0 %v4312_v11  ;;  %3037 = vmatpush1.bf16.msra.mxu1 %v4314_v13 }
 0x5a7   :  { %2997 = vmatprep.subr.bf16.mxu0 %v4324_v41  ;;  %3038 = vmatprep.subr.bf16.mxu1 %v4329_v44 }
 0x5aa   :  { %2998 = vmatpush1.bf16.msra.mxu0 %v4327_v42  ;;  %3039 = vmatpush1.bf16.msra.mxu1 %v4331_v46 }
 0x5ab   :  { %3310 = vmatprep.subr.bf16.mxu0 %v4247_v24  ;;  %3351 = vmatprep.subr.bf16.mxu1 %v4249_v25  ;;  %v2462_v24 = vld [vmem:[#allocation2 + $0x5] ss:$8 sm:$0xf] }
 0x64d   :  { %v2690_v33 = vpop.f32.mrf.mxu0  ;;  %v2731_v58 = vpop.f32.mrf.mxu1 }
 0x64f   :  { %v2692_v59 = vpop.f32.mrf.mxu0  ;;  %v2733_v60 = vpop.f32.mrf.mxu1 }
 0x650   :  { %v2742_v62 = vcombine.low %v2690_v33, %v2692_v59  ;;  %v2743_v63 = vcombine.low %v2731_v58, %v2733_v60  ;;  %v806_v59 = vld [vmem:[%s4735_s6 + $0x78] sm:$0xff]  ;;  %v805_v60 = vld [vmem:[%s4735_s6 + $0x70] sm:$0xff] }
 0x651   :  { %v2694_v49 = vpop.f32.mrf.mxu0  ;;  %v2735_v1 = vpop.f32.mrf.mxu1  ;;  %823 = vst.msk [vmem:[#allocation5 + $0x78] sm:$0xff] %vm807_vm1, %v806_v59  ;;  %822 = vst.msk [vmem:[#allocation5 + $0x70] sm:$0xff] %vm807_vm1, %v805_v60 }
 0x652   :  { %v2750_v3 = vrot.slane %v2742_v62, %v4378_v34  ;;  %v2757_v6 = vrot.slane %v2743_v63, %v4378_v34  ;;  %v804_v62 = vld [vmem:[%s4735_s6 + $0x68] sm:$0xff]  ;;  %v803_v63 = vld [vmem:[%s4735_s6 + $0x60] sm:$0xff]  ;;  %v802_v49 = vld [vmem:[%s4735_s6 + $0x58] sm:$0xff] }
 0x653   :  { %v2695_v7 = vpop.f32.mrf.mxu0  ;;  %v2736_v8 = vpop.f32.mrf.mxu1  ;;  %821 = vst.msk [vmem:[#allocation5 + $0x68] sm:$0xff] %vm807_vm1, %v804_v62  ;;  %v801_v1 = vld [vmem:[%s4735_s6 + $0x50] sm:$0xff]  ;;  %820 = vst.msk [vmem:[#allocation5 + $0x60] sm:$0xff] %vm807_vm1, %v803_v63 }
 0x654   :  { %v2758_v9 = vcombine.low %v2750_v3, %v2757_v6  ;;  %819 = vst.msk [vmem:[#allocation5 + $0x58] sm:$0xff] %vm807_vm1, %v802_v49  ;;  %818 = vst.msk [vmem:[#allocation5 + $0x50] sm:$0xff] %vm807_vm1, %v801_v1  ;;  %v800_v3 = vld [vmem:[%s4735_s6 + $0x48] sm:$0xff]  ;;  %v799_v6 = vld [vmem:[%s4735_s6 + $0x40] sm:$0xff] }
 0x655   :  { %v798_v7 = vld [vmem:[%s4735_s6 + $0x38] sm:$0xff]  ;;  %817 = vst.msk [vmem:[#allocation5 + $0x48] sm:$0xff] %vm807_vm1, %v800_v3  ;;  %816 = vst.msk [vmem:[#allocation5 + $0x40] sm:$0xff] %vm807_vm1, %v799_v6  ;;  %v797_v8 = vld [vmem:[%s4735_s6 + $0x30] sm:$0xff] }
 0x656   :  { %v2765_v14 = vrot.slane %v2758_v9, %v4378_v34  ;;  %815 = vst.msk [vmem:[#allocation5 + $0x38] sm:$0xff] %vm807_vm1, %v798_v7  ;;  %v796_v9 = vld [vmem:[%s4735_s6 + $0x28] sm:$0xff]  ;;  %814 = vst.msk [vmem:[#allocation5 + $0x30] sm:$0xff] %vm807_vm1, %v797_v8 }
 0x657   :  { %813 = vst.msk [vmem:[#allocation5 + $0x28] sm:$0xff] %vm807_vm1, %v796_v9 }
 0x658   :  { %v2767_v15 = vadd.f32 %v2765_v14, %v2462_v24  ;;  %v795_v14 = vld [vmem:[%s4735_s6 + $0x20] sm:$0xff]  ;;  %v794_v24 = vld [vmem:[%s4735_s6 + $0x18] sm:$0xff] }
 0x659   :  { %812 = vst.msk [vmem:[#allocation5 + $0x20] sm:$0xff] %vm807_vm1, %v795_v14  ;;  %811 = vst.msk [vmem:[#allocation5 + $0x18] sm:$0xff] %vm807_vm1, %v794_v24 }
 0x65a   :  { %4011 = vtanh.f32 %v2767_v15  ;;  %v793_v15 = vld [vmem:[%s4735_s6 + $0x10] sm:$0xff] }
 0x65b   :  { %810 = vst.msk [vmem:[#allocation5 + $0x10] sm:$0xff] %vm807_vm1, %v793_v15 }
 0x667   :  { %v4012_v25 = vpop.eup %4011 }
 0x668   :  { %v2769_v20 = vmul.f32 0.5, %v4012_v25  ;;  %v2772_v21 = vrot.slane %v4012_v25, 1  ;;  %v2781_v40 = vrot.slane %v4012_v25, 2  ;;  %v2776_v51 = vrot.slane %v4012_v25, 3  ;;  %v792_v25 = vld [vmem:[%s4735_s6 + $0x8] sm:$0xff] }
 0x669   :  { %809 = vst.msk [vmem:[#allocation5 + $0x8] sm:$0xff] %vm807_vm1, %v792_v25 }
 0x66a   :  { %v2770_v27 = vadd.f32 0.5, %v2769_v20  ;;  %v2774_v29 = vmul.f32 0.5, %v2772_v21  ;;  %v2778_v53 = vmul.f32 0.5, %v2776_v51  ;;  %v791_v20 = vld [vmem:[%s4735_s6] sm:$0xff] }
 0x66b   :  { %v3460_v21 = vld [vmem:[#allocation5 + $0x78] sm:$0xff] }
 0x66c   :  { %v2775_v36 = vadd.f32 0.5, %v2774_v29  ;;  %v2783_v43 = vmul.f32 %v2781_v40, %v2770_v27  ;;  %v2779_v35 = vadd.f32 0.5, %v2778_v53  ;;  %v3459_v27 = vld [vmem:[#allocation5 + $0x70] sm:$0xff]  ;;  %v3458_v29 = vld [vmem:[#allocation5 + $0x68] sm:$0xff]  ;;  %v3456_v40 = vld [vmem:[#allocation5 + $0x58] sm:$0xff] }
 0x66d   :  { %v3452_v51 = vld [vmem:[#allocation5 + $0x38] sm:$0xff]  ;;  %v3451_v53 = vld [vmem:[#allocation5 + $0x30] sm:$0xff] }
 0x66e   :  { %v2780_v19 = vmul.f32 %v2775_v36, %v4547_v50  ;;  %v3457_v36 = vld [vmem:[#allocation5 + $0x60] sm:$0xff] }
 0x670   :  { %v4588_v26 = vadd.f32 %v2783_v43, %v2780_v19  ;;  %v3455_v19 = vld [vmem:[#allocation5 + $0x50] sm:$0xff]  ;;  %v3454_v43 = vld [vmem:[#allocation5 + $0x48] sm:$0xff] }
 0x672   :  { %4013 = vtanh.f32 %v4588_v26 }
 0x67f   :  { %v4014_v54 = vpop.eup %4013 }
 0x680   :  { %v2786_v55 = vmul.f32 %v4014_v54, %v2779_v35  ;;  %v3450_v35 = vld [vmem:[#allocation5 + $0x28] sm:$0xff]  ;;  %v3449_v54 = vld [vmem:[#allocation5 + $0x20] sm:$0xff] }
 0x682   :  { %2787 = vst [vmem:[#allocation3 + $0x5] sm:$0x1] %v2786_v55  ;;  %v2790_v33 = vpack.c.bf16 %v2786_v55, %v2786_v55  ;;  %v3448_v55 = vld [vmem:[#allocation5 + $0x18] sm:$0xff] }
 0x684   :  { %3016 = vmatmul.mubr.bf16.vlgmr.msra.gmra.mxu0 %v2790_v33  ;;  %3057 = vmatmul.mubr.bf16.vlgmr.msra.gmra.mxu1 %v2790_v33  ;;  %v3447_v33 = vld [vmem:[#allocation5 + $0x10] sm:$0xff] }
 0x685   :  { %3311 = vmatpush1.bf16.msra.mxu0 %v4245_v23  ;;  %3352 = vmatpush1.bf16.msra.mxu1 %v4241_v12 }
 0x686   :  { %3312 = vmatprep.subr.bf16.mxu0 %v4253_v31  ;;  %3353 = vmatprep.subr.bf16.mxu1 %v4255_v32 }
 0x687   :  { %3342 = vmatprep.mubr.bf16.mxu0 %v4093_v0  ;;  %3383 = vmatprep.mubr.bf16.mxu1 %v4093_v0  ;;  %v4623_v0 = vld [vmem:[#allocation5] sm:$0xff] }
 0x688   :  { %808 = vst.msk [vmem:[#allocation5] sm:$0xff] %vm807_vm1, %v791_v20 }
 0x689   :  { %3313 = vmatpush1.bf16.msra.mxu0 %v4251_v30  ;;  %3354 = vmatpush1.bf16.msra.mxu1 %v4243_v17 }
 0x68a   :  { %3314 = vmatprep.subr.bf16.mxu0 %v4267_v4  ;;  %3355 = vmatprep.subr.bf16.mxu1 %v4269_v5 }
 0x68d   :  { %3315 = vmatpush1.bf16.msra.mxu0 %v4265_v61  ;;  %3356 = vmatpush1.bf16.msra.mxu1 %v4263_v56 }
 0x68e   :  { %3316 = vmatprep.subr.bf16.mxu0 %v4279_v38  ;;  %3357 = vmatprep.subr.bf16.mxu1 %v4282_v45 }
 0x691   :  { %3317 = vmatpush1.bf16.msra.mxu0 %v4277_v37  ;;  %3358 = vmatpush1.bf16.msra.mxu1 %v4275_v28 }
 0x692   :  { %3318 = vmatprep.subr.bf16.mxu0 %v4292_v10  ;;  %3359 = vmatprep.subr.bf16.mxu1 %v4295_v18 }
 0x695   :  { %3319 = vmatpush1.bf16.msra.mxu0 %v4289_v2  ;;  %3360 = vmatpush1.bf16.msra.mxu1 %v4286_v57  ;;  %v2789_v57 = vld [vmem:[#allocation2 + $0x6] ss:$8 sm:$0xf] }
 0x696   :  { %3320 = vmatprep.subr.bf16.mxu0 %v4304_v48  ;;  %3361 = vmatprep.subr.bf16.mxu1 %v4307_v52 }
 0x699   :  { %3321 = vmatpush1.bf16.msra.mxu0 %v4302_v47  ;;  %3362 = vmatpush1.bf16.msra.mxu1 %v4298_v39 }
 0x69a   :  { %3322 = vmatprep.subr.bf16.mxu0 %v4317_v16  ;;  %3363 = vmatprep.subr.bf16.mxu1 %v4319_v22 }
 0x69d   :  { %3323 = vmatpush1.bf16.msra.mxu0 %v4312_v11  ;;  %3364 = vmatpush1.bf16.msra.mxu1 %v4314_v13 }
 0x69e   :  { %3324 = vmatprep.subr.bf16.mxu0 %v4324_v41  ;;  %3365 = vmatprep.subr.bf16.mxu1 %v4329_v44 }
 0x6a1   :  { %3325 = vmatpush1.bf16.msra.mxu0 %v4327_v42  ;;  %3366 = vmatpush1.bf16.msra.mxu1 %v4331_v46 }
 0x6a2   :  { %3945 = vmatprep.subr.mxu0 %v4623_v0 }
 0x744   :  { %v3017_v12 = vpop.f32.mrf.mxu0  ;;  %v3058_v17 = vpop.f32.mrf.mxu1 }
 0x746   :  { %v3019_v23 = vpop.f32.mrf.mxu0  ;;  %v3060_v30 = vpop.f32.mrf.mxu1 }
 0x747   :  { %v3069_v31 = vcombine.low %v3017_v12, %v3019_v23  ;;  %v3070_v32 = vcombine.low %v3058_v17, %v3060_v30  ;;  %v3446_v12 = vld [vmem:[#allocation5 + $0x8] sm:$0xff]  ;;  %v3445_v17 = vld [vmem:[#allocation5] sm:$0xff]  ;;  %v825_v23 = vld [vmem:[%s4736_s7] sm:$0x1]  ;;  %s4097_s7 = smov [#allocation10]  }
 0x748   :  { %v3021_v56 = vpop.f32.mrf.mxu0  ;;  %v3062_v61 = vpop.f32.mrf.mxu1  ;;  %827 = vst.msk [vmem:[#allocation6] sm:$0x1] %vm826_vm3, %v825_v23  ;;  %s3547_s11 = sshll.u32 %s4097_s7, 4  ;;  %s3548_s11 = int_to_ptr.vmem [resolvable:$true] %s3547_s11 }
 0x749   :  { %v3077_v4 = vrot.slane %v3069_v31, %v4378_v34  ;;  %v3084_v5 = vrot.slane %v3070_v32, %v4378_v34  ;;  %s4044_s14 = scalar_lea.vmem %s3548_s11, 16  ;;  %s4048_s15 = scalar_lea.vmem %s3548_s11, 32 }
 0x74a   :  { %v3022_v28 = vpop.f32.mrf.mxu0  ;;  %v3063_v37 = vpop.f32.mrf.mxu1  ;;  %p4045_p5 = scmp.ne.s32.totalorder %s3548_s11, %s4044_s14  ;;  %p4049_p6 = scmp.lt.s32.totalorder %s3548_s11, %s3548_s11 }
 0x74b   :  { %v3085_v38 = vcombine.low %v3077_v4, %v3084_v5  ;;  %p4050_p7 = scmp.lt.s32.totalorder %s4048_s15, %s4044_s14 }
 0x74d   :  { %v3092_v45 = vrot.slane %v3085_v38, %v4378_v34  ;;  %p4051_p8 = por %p4050_p7, %p4049_p6 }
 0x74f   :  { %v3094_v2 = vadd.f32 %v3092_v45, %v2789_v57  ;;  %p4052_p9 = pnand %p4051_p8, %p4045_p5 }
 0x751   :  { %4015 = vtanh.f32 %v3094_v2 }
 0x75e   :  { %v4016_v10 = vpop.eup %4015 }
 0x75f   :  { %v3096_v18 = vmul.f32 0.5, %v4016_v10  ;;  %v3099_v39 = vrot.slane %v4016_v10, 1  ;;  %v3108_v11 = vrot.slane %v4016_v10, 2  ;;  %v3103_v41 = vrot.slane %v4016_v10, 3 }
 0x760   :  { %v3116_v10 = vld [vmem:[#allocation2 + $0x7] ss:$8 sm:$0xf] }
 0x761   :  { %v3097_v47 = vadd.f32 0.5, %v3096_v18  ;;  %v3101_v48 = vmul.f32 0.5, %v3099_v39  ;;  %v3105_v42 = vmul.f32 0.5, %v3103_v41 }
 0x763   :  { %v3102_v52 = vadd.f32 0.5, %v3101_v48  ;;  %v3110_v16 = vmul.f32 %v3108_v11, %v3097_v47  ;;  %v3106_v44 = vadd.f32 0.5, %v3105_v42 }
 0x765   :  { %v3107_v13 = vmul.f32 %v3102_v52, %v4588_v26  ;;  %v3453_v26 = vld [vmem:[#allocation5 + $0x40] sm:$0xff] }
 0x767   :  { %v4630_v22 = vadd.f32 %v3110_v16, %v3107_v13 }
 0x769   :  { %4017 = vtanh.f32 %v4630_v22 }
 0x776   :  { %v4018_v46 = vpop.eup %4017 }
 0x777   :  { %v3113_v50 = vmul.f32 %v4018_v46, %v3106_v44 }
 0x779   :  { %3114 = vst [vmem:[#allocation3 + $0x6] sm:$0x1] %v3113_v50  ;;  %v3117_v58 = vpack.c.bf16 %v3113_v50, %v3113_v50 }
 0x77b   :  { %3343 = vmatmul.mubr.bf16.vlgmr.msra.gmra.mxu0 %v3117_v58  ;;  %3384 = vmatmul.mubr.bf16.vlgmr.msra.gmra.mxu1 %v3117_v58 }
 0x77c   :  { %3977 = vmatprep.mubr.msk.f32.mxu0 %vm4096_vm2, %v4623_v0  ;;  %3946 = vmatpush3.msra.mxu0 %v3460_v21 }
 0x77d   :  { %3947 = vmatprep.subr.mxu0 %v4623_v0 }
 0x77e   :  { %3948 = vmatpush3.msra.mxu0 %v3459_v27 }
 0x77f   :  { %3949 = vmatprep.subr.mxu0 %v4623_v0 }
 0x780   :  { %3950 = vmatpush3.msra.mxu0 %v3458_v29 }
 0x781   :  { %3951 = vmatprep.subr.mxu0 %v4623_v0 }
 0x782   :  { %3952 = vmatpush3.msra.mxu0 %v3457_v36 }
 0x783   :  { %3953 = vmatprep.subr.mxu0 %v4623_v0 }
 0x784   :  { %3954 = vmatpush3.msra.mxu0 %v3456_v40 }
 0x785   :  { %3955 = vmatprep.subr.mxu0 %v4623_v0 }
 0x786   :  { %3956 = vmatpush3.msra.mxu0 %v3455_v19 }
 0x787   :  { %3957 = vmatprep.subr.mxu0 %v4623_v0 }
 0x788   :  { %3958 = vmatpush3.msra.mxu0 %v3454_v43 }
 0x789   :  { %3959 = vmatprep.subr.mxu0 %v4623_v0 }
 0x78a   :  { %3960 = vmatpush3.msra.mxu0 %v3453_v26 }
 0x78b   :  { %3961 = vmatprep.subr.mxu0 %v4623_v0 }
 0x78c   :  { %3962 = vmatpush3.msra.mxu0 %v3452_v51 }
 0x78d   :  { %3963 = vmatprep.subr.mxu0 %v4623_v0 }
 0x78e   :  { %3964 = vmatpush3.msra.mxu0 %v3451_v53 }
 0x78f   :  { %3965 = vmatprep.subr.mxu0 %v4623_v0 }
 0x790   :  { %3966 = vmatpush3.msra.mxu0 %v3450_v35 }
 0x791   :  { %3967 = vmatprep.subr.mxu0 %v4623_v0 }
 0x792   :  { %3968 = vmatpush3.msra.mxu0 %v3449_v54 }
 0x793   :  { %3969 = vmatprep.subr.mxu0 %v4623_v0 }
 0x794   :  { %3970 = vmatpush3.msra.mxu0 %v3448_v55 }
 0x795   :  { %3971 = vmatprep.subr.mxu0 %v4623_v0 }
 0x796   :  { %3972 = vmatpush3.msra.mxu0 %v3447_v33 }
 0x797   :  { %3973 = vmatprep.subr.mxu0 %v4623_v0 }
 0x798   :  { %3974 = vmatpush3.msra.mxu0 %v3446_v12 }
 0x799   :  { %3975 = vmatprep.subr.mxu0 %v4623_v0 }
 0x79a   :  { %3976 = vmatpush3.msra.mxu0 %v3445_v17 }
 0x83b   :  { %v3344_v30 = vpop.f32.mrf.mxu0  ;;  %v3385_v31 = vpop.f32.mrf.mxu1 }
 0x83d   :  { %v3346_v32 = vpop.f32.mrf.mxu0  ;;  %v3387_v56 = vpop.f32.mrf.mxu1 }
 0x83e   :  { %v3396_v61 = vcombine.low %v3344_v30, %v3346_v32  ;;  %v3397_v4 = vcombine.low %v3385_v31, %v3387_v56 }
 0x83f   :  { %v3348_v5 = vpop.f32.mrf.mxu0  ;;  %v3389_v28 = vpop.f32.mrf.mxu1 }
 0x840   :  { %v3404_v37 = vrot.slane %v3396_v61, %v4378_v34  ;;  %v3411_v38 = vrot.slane %v3397_v4, %v4378_v34 }
 0x841   :  { %v3349_v0 = vpop.f32.mrf.mxu0  ;;  %v3390_v45 = vpop.f32.mrf.mxu1 }
 0x842   :  { %v3412_v57 = vcombine.low %v3404_v37, %v3411_v38 }
 0x844   :  { %v3419_v2 = vrot.slane %v3412_v57, %v4378_v34 }
 0x846   :  { %v3421_v18 = vadd.f32 %v3419_v2, %v3116_v10 }
 0x848   :  { %4019 = vtanh.f32 %v3421_v18 }
 0x855   :  { %v4020_v39 = vpop.eup %4019 }
 0x856   :  { %v3423_v47 = vmul.f32 0.5, %v4020_v39  ;;  %v3426_v48 = vrot.slane %v4020_v39, 1  ;;  %v3435_v16 = vrot.slane %v4020_v39, 2  ;;  %v3430_v46 = vrot.slane %v4020_v39, 3 }
 0x858   :  { %v3424_v52 = vadd.f32 0.5, %v3423_v47  ;;  %v3428_v11 = vmul.f32 0.5, %v3426_v48  ;;  %v3432_v50 = vmul.f32 0.5, %v3430_v46 }
 0x85a   :  { %v3429_v13 = vadd.f32 0.5, %v3428_v11  ;;  %v3437_v42 = vmul.f32 %v3435_v16, %v3424_v52  ;;  %v3433_v58 = vadd.f32 0.5, %v3432_v50 }
 0x85c   :  { %v3434_v41 = vmul.f32 %v3429_v13, %v4630_v22 }
 0x85e   :  { %v3438_v44 = vadd.f32 %v3437_v42, %v3434_v41 }
 0x860   :  { %4021 = vtanh.f32 %v3438_v44  ;;  %3443 = vst [vmem:[#allocation11] sm:$0x1] %v3438_v44 }
 0x86d   :  { %v4022_v34 = vpop.eup %4021 }
 0x86e   :  { %v3440_v59 = vmul.f32 %v4022_v34, %v3433_v58 }
 0x870   :  { %3441 = vst [vmem:[#allocation3 + $0x7] sm:$0x1] %v3440_v59  ;;  %3442 = vst [vmem:[#allocation10] sm:$0x1] %v3440_v59 }
 0x877   :  { %v3444_v60 = vld [vmem:[#allocation3] sm:$0xff] }
 0x878   :  { %3978 = vmatmul.mubr.f32.vlgmr.msra.gmra.mxu0 %v3444_v60 }
 0x879   :  { %4055 = shalt.err (!%p4052_p9)
}
 0x87a   :  { %3550 = dma.vmem_to_hbm [thread:$0]  %s3548_s11, 16, %s4738_s9, [#allocation9]  }
 0x87b   :  { %s4064_s18 = scalar_lea.vmem %s3558_s13, 16  ;;  %s4068_s3 = scalar_lea.vmem %s3558_s13, 32 }
 0x87c   :  { %p4065_p10 = scmp.ne.s32.totalorder %s3558_s13, %s4064_s18  ;;  %p4069_p11 = scmp.lt.s32.totalorder %s3558_s13, %s3558_s13 }
 0x87d   :  { %p4070_p12 = scmp.lt.s32.totalorder %s4068_s3, %s4064_s18 }
 0x87f   :  { %p4071_p13 = por %p4070_p12, %p4069_p11 }
 0x881   :  { %p4072_p0 = pnand %p4071_p13, %p4065_p10 }
 0x883   :  { %4075 = shalt.err (!%p4072_p0)
}
 0x884   :  { %3560 = dma.vmem_to_hbm [thread:$0]  %s3558_s13, 16, %s4739_s10, [#allocation12]   ;;  %v3863_v22 = vld [vmem:[#allocation6] ss:$0 sm:$0xff] }
 0x938   :  { %v3534_v62 = vpop.f32.mrf.mxu0 }
 0x939   :  { %v3535_v63 = vadd.f32 %v3863_v22, %v3534_v62 }
 0x93a   :  { %v3979_v49 = vpop.f32.mrf.mxu0 }
 0x93b   :  { %3538 = vst [vmem:[%s4737_s8] sm:$0xff] %v3535_v63 }
 0x93c   :  { %4086 = dma.done.wait [#allocation9], 16  }
 0x93d   :  { %4087 = vsyncadd [#allocation9], 4294967280 }
 0x93e   :  { %4088 = dma.done.wait [#allocation12], 16  }
 0x93f   :  { %4089 = vsyncadd [#allocation12], 4294967280 }
 0x940   :  { %3569 = vsyncpa [#allocation8], 1 }
 0x941   :  { %3570 = vsyncpa [#allocation9], 1 }
 0x942   :  { %3571 = vsyncpa [#allocation12], 1 }

</bundles_post_ra>
